<compile_context>
chip_gen: v7x
topology: tpu7x:2x2x1
jax: 0.10.0
libtpu: 0.0.40
codegen_flags: <defaults>
</compile_context>

<pallas_src>
import functools

import jax
import jax.numpy as jnp
from jax import lax
from jax.experimental import pallas as pl
from jax.experimental.pallas import tpu as pltpu

EPS = 1e-9
_LANES = 128
_STRIP_ROWS = 64        # rows kept live in vregs per inner-loop step
_MAX_TILE_ROWS = 1024   # 1 MiB interleaved f32 output block per grid step


def _cdiv(a, b):
    return -(-a // b)


def _tps_grid_kernel(params_ref, sel_ref, o_ref, cc_ref, *, k, img_w, img_h,
                     tile_rows, strip_rows):
    b = pl.program_id(0)          # batch index
    t = pl.program_id(1)          # spatial tile index

    # Per-batch TPS parameters, read once from SMEM (loop-invariant scalars).
    # params layout per batch: [X(k,2) | W(k,2) | A(3,2)] flattened.
    xs = [(params_ref[b, 2 * j], params_ref[b, 2 * j + 1]) for j in range(k)]
    ws = [(params_ref[b, 2 * k + 2 * j], params_ref[b, 2 * k + 2 * j + 1])
          for j in range(k)]
    a = [params_ref[b, 4 * k + i] for i in range(6)]

    w_f = float(img_w)
    inv_w = 1.0 / w_f
    sx = 2.0 / (img_w - 1) if img_w > 1 else 0.0   # linspace(-1, 1, w) step
    sy = 2.0 / (img_h - 1) if img_h > 1 else 0.0

    # Strip-local flattened offset, hoisted out of the strip loop.
    ii = lax.broadcasted_iota(jnp.int32, (strip_rows, _LANES), 0)
    jj = lax.broadcasted_iota(jnp.int32, (strip_rows, _LANES), 1)
    within = (ii * _LANES + jj).astype(jnp.float32)

    n_strips = tile_rows // strip_rows
    tile_base = t * (tile_rows * _LANES)

    def strip(s, carry):
        # Flattened grid index p = row*img_w + col, generated in-kernel (no
        # HBM traffic).  f32 is exact for p < 2**24 and the floor() split is
        # exact for h*w < ~2**21.
        # TODO(synk): switch to 2-D (h, w) spatial tiling for larger grids.
        base = (tile_base + s * (strip_rows * _LANES)).astype(jnp.float32)
        p = base + within
        r = jnp.floor((p + 0.5) * inv_w)             # image row
        c = p - r * w_f                              # image col
        gx = c * sx - 1.0
        gy = r * sy - 1.0

        # Affine part  P @ A  with P = [1, gx, gy]  (scalar broadcasts).
        acc_x = a[0] + gx * a[2] + gy * a[4]
        acc_y = a[1] + gx * a[3] + gy * a[5]

        # TPS radial part  U @ W : unrolled VPU/EUP loop over the (small,
        # static) k control points; all intermediates stay in vregs.
        # TODO(synk): for k >= ~16 switch to lax.fori_loop(..., unroll=4).
        for j in range(k):
            dx = gx - xs[j][0]
            dy = gy - xs[j][1]
            d2 = dx * dx + dy * dy
            u = d2 * jnp.log(d2 + EPS)
            acc_x = acc_x + u * ws[j][0]
            acc_y = acc_y + u * ws[j][1]

        row0 = pl.multiple_of(s * strip_rows, strip_rows)
        cc_ref[pl.ds(row0, strip_rows), 0:_LANES] = acc_x            # x half
        cc_ref[pl.ds(row0, strip_rows), _LANES:2 * _LANES] = acc_y   # y half
        return carry

    lax.fori_loop(0, n_strips, strip, 0,
                  unroll=2 if n_strips % 2 == 0 else 1)

    # Interleave x/y along the lane axis with one 0/1-selection matmul on the
    # otherwise-idle MXU:  out[:, 2q] = acc_x[:, q], out[:, 2q+1] = acc_y[:, q].
    # One big per-tile dot so the (256,256) RHS weight load is amortized over
    # tile_rows LHS rows; HIGHEST precision keeps full f32 accuracy.
    o_ref[0, :, :] = jnp.dot(cc_ref[...], sel_ref[...],
                             preferred_element_type=jnp.float32,
                             precision=lax.Precision.HIGHEST)


def _tile_plan(hw, n):
    nrows = _cdiv(hw, _LANES)
    want_tiles = 2 if n == 1 else 1       # give v7x's two TCs >= 2 grid steps
    tr = min(_cdiv(nrows, want_tiles), _MAX_TILE_ROWS)
    tr = _cdiv(tr, 8) * 8                 # sublane alignment
    if tr >= _STRIP_ROWS:
        tr = _cdiv(tr, _STRIP_ROWS) * _STRIP_ROWS
        strip = _STRIP_ROWS
    else:
        strip = tr
    nrows_pad = _cdiv(nrows, tr) * tr
    return tr, strip, nrows_pad, nrows_pad // tr


def _interleave_matrix():
    # sel[l, m] = 1  iff  m == 2*(l % 128) + l // 128
    # (columns 0..127 of cc are x, 128..255 are y  ->  lanes x0,y0,x1,y1,...)
    l = jnp.arange(2 * _LANES)
    m = jnp.arange(2 * _LANES)
    return (m[None, :] == (2 * (l % _LANES) + l // _LANES)[:, None]
            ).astype(jnp.float32)


def _tps_warp_pallas(params, w, h):
    n = params.shape[0]
    k = (params.shape[1] - 6) // 4
    hw = h * w
    tr, strip, nrows_pad, n_tiles = _tile_plan(hw, n)
    sel = _interleave_matrix()

    kernel = functools.partial(_tps_grid_kernel, k=k, img_w=w, img_h=h,
                               tile_rows=tr, strip_rows=strip)
    return pl.pallas_call(
        kernel,
        out_shape=jax.ShapeDtypeStruct((n, nrows_pad, 2 * _LANES), jnp.float32),
        grid_spec=pltpu.PrefetchScalarGridSpec(
            num_scalar_prefetch=0,
            grid=(n, n_tiles),
            in_specs=[
                # packed per-batch parameters: scalars, straight from SMEM
                pl.BlockSpec(memory_space=pltpu.MemorySpace.SMEM),
                # constant lane-interleave selection matrix (index map is
                # constant -> DMA'd once, stays resident in VMEM)
                pl.BlockSpec((2 * _LANES, 2 * _LANES), lambda b, t: (0, 0)),
            ],
            out_specs=pl.BlockSpec((1, tr, 2 * _LANES),
                                   lambda b, t: (b, t, 0)),
            scratch_shapes=[pltpu.VMEM((tr, 2 * _LANES), jnp.float32)],
        ),
        compiler_params=pltpu.CompilerParams(
            dimension_semantics=("parallel", "parallel")),
        cost_estimate=pl.CostEstimate(
            flops=n * nrows_pad * _LANES * (10 * k + 20 + 4 * _LANES),
            transcendentals=n * nrows_pad * _LANES * k,
            bytes_accessed=n * nrows_pad * 2 * _LANES * 4
                           + n * (4 * k + 6) * 4 + 4 * (2 * _LANES) ** 2),
    )(params, sel)


def _solve_tps(X, Y):
    # Small batched (k+3)x(k+3) solve (torch.solve(Z, L)) -> plain JAX glue.
    # TODO(synk): no clean Pallas primitive for a general dense linear solve.
    n, k, _ = X.shape
    D2 = jnp.sum((X[:, :, None, :] - X[:, None, :, :]) ** 2, axis=-1)
    K = D2 * jnp.log(D2 + EPS)
    P = jnp.concatenate([jnp.ones((n, k, 1), jnp.float32), X], axis=-1)
    L = jnp.zeros((n, k + 3, k + 3), jnp.float32)
    L = L.at[:, :k, :k].set(K)
    L = L.at[:, :k, k:].set(P)
    L = L.at[:, k:, :k].set(jnp.transpose(P, (0, 2, 1)))
    Z = jnp.zeros((1, k + 3, 2), jnp.float32)
    Z = Z.at[:, :k, :].set(Y)               # torch code assumes Y leading dim 1
    Z = jnp.broadcast_to(Z, (n, k + 3, 2))
    Q = jnp.linalg.solve(L, Z)              # == torch.solve(Z, L)[0]
    return Q[:, :k], Q[:, k:]               # W, A


@functools.partial(jax.jit, static_argnums=(2, 3))
def tps_forward(X, Y, w, h):
    n, k, _ = X.shape
    W, A = _solve_tps(X, Y)
    params = jnp.concatenate(
        [X.reshape(n, 2 * k), W.reshape(n, 2 * k), A.reshape(n, 6)],
        axis=-1).astype(jnp.float32)
    out = _tps_warp_pallas(params, w, h)           # (n, nrows_pad, 256)
    hw = h * w
    out = out.reshape(n, -1, 2)                    # (n, nrows_pad*128, 2)
    if out.shape[1] != hw:                         # drop lane padding
        out = out[:, :hw, :]
    return out.reshape(-1, h, w, 2)


def _build_grid(w, h):
    gx = jnp.linspace(-1.0, 1.0, w, dtype=jnp.float32)
    gy = jnp.linspace(-1.0, 1.0, h, dtype=jnp.float32)
    gxx = jnp.broadcast_to(gx[None, :], (h, w))
    gyy = jnp.broadcast_to(gy[:, None], (h, w))
    return jnp.stack([gxx, gyy], axis=-1).reshape(h * w, 2)


def tps_reference(X, Y, w, h):
    # Pure-JAX re-implementation of the torch forward, for validation.
    W, A = _solve_tps(X, Y)
    grid_pts = _build_grid(w, h)[None]             # (1, HW, 2)
    D2 = jnp.sum((grid_pts[:, :, None, :] - X[:, None, :, :]) ** 2, axis=-1)
    U = D2 * jnp.log(D2 + EPS)
    hw = grid_pts.shape[1]
    P = jnp.concatenate([jnp.ones((1, hw, 1), jnp.float32), grid_pts], axis=-1)
    out = jnp.matmul(P, A) + jnp.matmul(U, W)
    return out.reshape(-1, h, w, 2)


if __name__ == "__main__":
    key = jax.random.PRNGKey(0)
    kx, ky = jax.random.split(key)
    n, k, h, w = 2, 5, 16, 16
    X = jax.random.uniform(kx, (n, k, 2), jnp.float32, -0.9, 0.9)      # control pts
    Y = X[0:1] + 0.05 * jax.random.normal(ky, (1, k, 2), jnp.float32)  # targets

    out = tps_forward(X, Y, w, h)
    out = jax.block_until_ready(out)

    ref = tps_reference(X, Y, w, h)
    assert out.shape == (n, h, w, 2), out.shape
    err = float(jnp.max(jnp.abs(out - ref)))
    # Kernel builds the linspace grid analytically in-kernel; tolerate a few
    # float32 ulps of difference vs jnp.linspace in the reference.
    assert err < 5e-4, err
    print("KERNEL_OK")
</pallas_src>

<mosaic_0001>
module attributes {stable_mosaic.version = 11 : i64} {
  func.func @_tps_grid_kernel(%arg0: i32, %arg1: i32, %arg2: memref<2x26xf32, #tpu.memory_space<smem>>, %arg3: memref<256x256xf32, #tpu.memory_space<vmem>>, %arg4: memref<1x8x256xf32, #tpu.memory_space<vmem>>, %arg5: memref<8x256xf32, #tpu.memory_space<vmem>>) attributes {dimension_semantics = [#tpu.dimension_semantics<parallel>, #tpu.dimension_semantics<parallel>], iteration_bounds = array<i64: 2, 1>, scalar_prefetch = 0 : i64, scratch_operands = 1 : i64, tpu.core_type = #tpu.core_type<tc>, window_params = [{transform_indices = @transform_0, window_bounds = array<i64: 2, 26>}, {pipeline_mode = #tpu.pipeline_mode<synchronous>, transform_indices = @transform_1, window_bounds = array<i64: 256, 256>}, {transform_indices = @transform_2, window_bounds = array<i64: 1, 8, 256>}]} {
    %0 = arith.index_cast %arg0 : i32 to index
    %c0 = arith.constant 0 : index
    %1 = memref.load %arg2[%0, %c0] : memref<2x26xf32, #tpu.memory_space<smem>>
    %2 = arith.index_cast %arg0 : i32 to index
    %c1 = arith.constant 1 : index
    %3 = memref.load %arg2[%2, %c1] : memref<2x26xf32, #tpu.memory_space<smem>>
    %4 = arith.index_cast %arg0 : i32 to index
    %c2 = arith.constant 2 : index
    %5 = memref.load %arg2[%4, %c2] : memref<2x26xf32, #tpu.memory_space<smem>>
    %6 = arith.index_cast %arg0 : i32 to index
    %c3 = arith.constant 3 : index
    %7 = memref.load %arg2[%6, %c3] : memref<2x26xf32, #tpu.memory_space<smem>>
    %8 = arith.index_cast %arg0 : i32 to index
    %c4 = arith.constant 4 : index
    %9 = memref.load %arg2[%8, %c4] : memref<2x26xf32, #tpu.memory_space<smem>>
    %10 = arith.index_cast %arg0 : i32 to index
    %c5 = arith.constant 5 : index
    %11 = memref.load %arg2[%10, %c5] : memref<2x26xf32, #tpu.memory_space<smem>>
    %12 = arith.index_cast %arg0 : i32 to index
    %c6 = arith.constant 6 : index
    %13 = memref.load %arg2[%12, %c6] : memref<2x26xf32, #tpu.memory_space<smem>>
    %14 = arith.index_cast %arg0 : i32 to index
    %c7 = arith.constant 7 : index
    %15 = memref.load %arg2[%14, %c7] : memref<2x26xf32, #tpu.memory_space<smem>>
    %16 = arith.index_cast %arg0 : i32 to index
    %c8 = arith.constant 8 : index
    %17 = memref.load %arg2[%16, %c8] : memref<2x26xf32, #tpu.memory_space<smem>>
    %18 = arith.index_cast %arg0 : i32 to index
    %c9 = arith.constant 9 : index
    %19 = memref.load %arg2[%18, %c9] : memref<2x26xf32, #tpu.memory_space<smem>>
    %20 = arith.index_cast %arg0 : i32 to index
    %c10 = arith.constant 10 : index
    %21 = memref.load %arg2[%20, %c10] : memref<2x26xf32, #tpu.memory_space<smem>>
    %22 = arith.index_cast %arg0 : i32 to index
    %c11 = arith.constant 11 : index
    %23 = memref.load %arg2[%22, %c11] : memref<2x26xf32, #tpu.memory_space<smem>>
    %24 = arith.index_cast %arg0 : i32 to index
    %c12 = arith.constant 12 : index
    %25 = memref.load %arg2[%24, %c12] : memref<2x26xf32, #tpu.memory_space<smem>>
    %26 = arith.index_cast %arg0 : i32 to index
    %c13 = arith.constant 13 : index
    %27 = memref.load %arg2[%26, %c13] : memref<2x26xf32, #tpu.memory_space<smem>>
    %28 = arith.index_cast %arg0 : i32 to index
    %c14 = arith.constant 14 : index
    %29 = memref.load %arg2[%28, %c14] : memref<2x26xf32, #tpu.memory_space<smem>>
    %30 = arith.index_cast %arg0 : i32 to index
    %c15 = arith.constant 15 : index
    %31 = memref.load %arg2[%30, %c15] : memref<2x26xf32, #tpu.memory_space<smem>>
    %32 = arith.index_cast %arg0 : i32 to index
    %c16 = arith.constant 16 : index
    %33 = memref.load %arg2[%32, %c16] : memref<2x26xf32, #tpu.memory_space<smem>>
    %34 = arith.index_cast %arg0 : i32 to index
    %c17 = arith.constant 17 : index
    %35 = memref.load %arg2[%34, %c17] : memref<2x26xf32, #tpu.memory_space<smem>>
    %36 = arith.index_cast %arg0 : i32 to index
    %c18 = arith.constant 18 : index
    %37 = memref.load %arg2[%36, %c18] : memref<2x26xf32, #tpu.memory_space<smem>>
    %38 = arith.index_cast %arg0 : i32 to index
    %c19 = arith.constant 19 : index
    %39 = memref.load %arg2[%38, %c19] : memref<2x26xf32, #tpu.memory_space<smem>>
    %40 = arith.index_cast %arg0 : i32 to index
    %c20 = arith.constant 20 : index
    %41 = memref.load %arg2[%40, %c20] : memref<2x26xf32, #tpu.memory_space<smem>>
    %42 = arith.index_cast %arg0 : i32 to index
    %c21 = arith.constant 21 : index
    %43 = memref.load %arg2[%42, %c21] : memref<2x26xf32, #tpu.memory_space<smem>>
    %44 = arith.index_cast %arg0 : i32 to index
    %c22 = arith.constant 22 : index
    %45 = memref.load %arg2[%44, %c22] : memref<2x26xf32, #tpu.memory_space<smem>>
    %46 = arith.index_cast %arg0 : i32 to index
    %c23 = arith.constant 23 : index
    %47 = memref.load %arg2[%46, %c23] : memref<2x26xf32, #tpu.memory_space<smem>>
    %48 = arith.index_cast %arg0 : i32 to index
    %c24 = arith.constant 24 : index
    %49 = memref.load %arg2[%48, %c24] : memref<2x26xf32, #tpu.memory_space<smem>>
    %50 = arith.index_cast %arg0 : i32 to index
    %c25 = arith.constant 25 : index
    %51 = memref.load %arg2[%50, %c25] : memref<2x26xf32, #tpu.memory_space<smem>>
    %52 = tpu.iota {dimensions = array<i32: 0>} : vector<8x128xi32>
    %53 = tpu.iota {dimensions = array<i32: 1>} : vector<8x128xi32>
    %c128_i32 = arith.constant 128 : i32
    %54 = vector.broadcast %c128_i32 : i32 to vector<8x128xi32>
    %55 = arith.muli %52, %54 : vector<8x128xi32>
    %56 = arith.addi %55, %53 : vector<8x128xi32>
    %57 = arith.sitofp %56 : vector<8x128xi32> to vector<8x128xf32>
    %c1024_i32 = arith.constant 1024 : i32
    %58 = arith.muli %arg1, %c1024_i32 : i32
    %c0_i32 = arith.constant 0 : i32
    %c1024_i32_0 = arith.constant 1024 : i32
    %59 = arith.muli %c0_i32, %c1024_i32_0 : i32
    %60 = arith.addi %58, %59 : i32
    %61 = arith.sitofp %60 : i32 to f32
    %62 = vector.broadcast %61 : f32 to vector<8x128xf32>
    %63 = arith.addf %62, %57 : vector<8x128xf32>
    %cst = arith.constant 5.000000e-01 : f32
    %64 = vector.broadcast %cst : f32 to vector<8x128xf32>
    %65 = arith.addf %63, %64 : vector<8x128xf32>
    %cst_1 = arith.constant 6.250000e-02 : f32
    %66 = vector.broadcast %cst_1 : f32 to vector<8x128xf32>
    %67 = arith.mulf %65, %66 : vector<8x128xf32>
    %68 = math.floor %67 : vector<8x128xf32>
    %cst_2 = arith.constant 1.600000e+01 : f32
    %69 = vector.broadcast %cst_2 : f32 to vector<8x128xf32>
    %70 = arith.mulf %68, %69 : vector<8x128xf32>
    %71 = arith.subf %63, %70 : vector<8x128xf32>
    %cst_3 = arith.constant 0.13333334 : f32
    %72 = vector.broadcast %cst_3 : f32 to vector<8x128xf32>
    %73 = arith.mulf %71, %72 : vector<8x128xf32>
    %cst_4 = arith.constant 1.000000e+00 : f32
    %74 = vector.broadcast %cst_4 : f32 to vector<8x128xf32>
    %75 = arith.subf %73, %74 : vector<8x128xf32>
    %cst_5 = arith.constant 0.13333334 : f32
    %76 = vector.broadcast %cst_5 : f32 to vector<8x128xf32>
    %77 = arith.mulf %68, %76 : vector<8x128xf32>
    %cst_6 = arith.constant 1.000000e+00 : f32
    %78 = vector.broadcast %cst_6 : f32 to vector<8x128xf32>
    %79 = arith.subf %77, %78 : vector<8x128xf32>
    %80 = vector.broadcast %45 : f32 to vector<8x128xf32>
    %81 = arith.mulf %75, %80 : vector<8x128xf32>
    %82 = vector.broadcast %41 : f32 to vector<8x128xf32>
    %83 = arith.addf %82, %81 : vector<8x128xf32>
    %84 = vector.broadcast %49 : f32 to vector<8x128xf32>
    %85 = arith.mulf %79, %84 : vector<8x128xf32>
    %86 = arith.addf %83, %85 : vector<8x128xf32>
    %87 = vector.broadcast %47 : f32 to vector<8x128xf32>
    %88 = arith.mulf %75, %87 : vector<8x128xf32>
    %89 = vector.broadcast %43 : f32 to vector<8x128xf32>
    %90 = arith.addf %89, %88 : vector<8x128xf32>
    %91 = vector.broadcast %51 : f32 to vector<8x128xf32>
    %92 = arith.mulf %79, %91 : vector<8x128xf32>
    %93 = arith.addf %90, %92 : vector<8x128xf32>
    %94 = vector.broadcast %1 : f32 to vector<8x128xf32>
    %95 = arith.subf %75, %94 : vector<8x128xf32>
    %96 = vector.broadcast %3 : f32 to vector<8x128xf32>
    %97 = arith.subf %79, %96 : vector<8x128xf32>
    %98 = arith.mulf %95, %95 : vector<8x128xf32>
    %99 = arith.mulf %97, %97 : vector<8x128xf32>
    %100 = arith.addf %98, %99 : vector<8x128xf32>
    %cst_7 = arith.constant 9.99999971E-10 : f32
    %101 = vector.broadcast %cst_7 : f32 to vector<8x128xf32>
    %102 = arith.addf %100, %101 : vector<8x128xf32>
    %103 = math.log %102 : vector<8x128xf32>
    %104 = arith.mulf %100, %103 : vector<8x128xf32>
    %105 = vector.broadcast %21 : f32 to vector<8x128xf32>
    %106 = arith.mulf %104, %105 : vector<8x128xf32>
    %107 = arith.addf %86, %106 : vector<8x128xf32>
    %108 = vector.broadcast %23 : f32 to vector<8x128xf32>
    %109 = arith.mulf %104, %108 : vector<8x128xf32>
    %110 = arith.addf %93, %109 : vector<8x128xf32>
    %111 = vector.broadcast %5 : f32 to vector<8x128xf32>
    %112 = arith.subf %75, %111 : vector<8x128xf32>
    %113 = vector.broadcast %7 : f32 to vector<8x128xf32>
    %114 = arith.subf %79, %113 : vector<8x128xf32>
    %115 = arith.mulf %112, %112 : vector<8x128xf32>
    %116 = arith.mulf %114, %114 : vector<8x128xf32>
    %117 = arith.addf %115, %116 : vector<8x128xf32>
    %cst_8 = arith.constant 9.99999971E-10 : f32
    %118 = vector.broadcast %cst_8 : f32 to vector<8x128xf32>
    %119 = arith.addf %117, %118 : vector<8x128xf32>
    %120 = math.log %119 : vector<8x128xf32>
    %121 = arith.mulf %117, %120 : vector<8x128xf32>
    %122 = vector.broadcast %25 : f32 to vector<8x128xf32>
    %123 = arith.mulf %121, %122 : vector<8x128xf32>
    %124 = arith.addf %107, %123 : vector<8x128xf32>
    %125 = vector.broadcast %27 : f32 to vector<8x128xf32>
    %126 = arith.mulf %121, %125 : vector<8x128xf32>
    %127 = arith.addf %110, %126 : vector<8x128xf32>
    %128 = vector.broadcast %9 : f32 to vector<8x128xf32>
    %129 = arith.subf %75, %128 : vector<8x128xf32>
    %130 = vector.broadcast %11 : f32 to vector<8x128xf32>
    %131 = arith.subf %79, %130 : vector<8x128xf32>
    %132 = arith.mulf %129, %129 : vector<8x128xf32>
    %133 = arith.mulf %131, %131 : vector<8x128xf32>
    %134 = arith.addf %132, %133 : vector<8x128xf32>
    %cst_9 = arith.constant 9.99999971E-10 : f32
    %135 = vector.broadcast %cst_9 : f32 to vector<8x128xf32>
    %136 = arith.addf %134, %135 : vector<8x128xf32>
    %137 = math.log %136 : vector<8x128xf32>
    %138 = arith.mulf %134, %137 : vector<8x128xf32>
    %139 = vector.broadcast %29 : f32 to vector<8x128xf32>
    %140 = arith.mulf %138, %139 : vector<8x128xf32>
    %141 = arith.addf %124, %140 : vector<8x128xf32>
    %142 = vector.broadcast %31 : f32 to vector<8x128xf32>
    %143 = arith.mulf %138, %142 : vector<8x128xf32>
    %144 = arith.addf %127, %143 : vector<8x128xf32>
    %145 = vector.broadcast %13 : f32 to vector<8x128xf32>
    %146 = arith.subf %75, %145 : vector<8x128xf32>
    %147 = vector.broadcast %15 : f32 to vector<8x128xf32>
    %148 = arith.subf %79, %147 : vector<8x128xf32>
    %149 = arith.mulf %146, %146 : vector<8x128xf32>
    %150 = arith.mulf %148, %148 : vector<8x128xf32>
    %151 = arith.addf %149, %150 : vector<8x128xf32>
    %cst_10 = arith.constant 9.99999971E-10 : f32
    %152 = vector.broadcast %cst_10 : f32 to vector<8x128xf32>
    %153 = arith.addf %151, %152 : vector<8x128xf32>
    %154 = math.log %153 : vector<8x128xf32>
    %155 = arith.mulf %151, %154 : vector<8x128xf32>
    %156 = vector.broadcast %33 : f32 to vector<8x128xf32>
    %157 = arith.mulf %155, %156 : vector<8x128xf32>
    %158 = arith.addf %141, %157 : vector<8x128xf32>
    %159 = vector.broadcast %35 : f32 to vector<8x128xf32>
    %160 = arith.mulf %155, %159 : vector<8x128xf32>
    %161 = arith.addf %144, %160 : vector<8x128xf32>
    %162 = vector.broadcast %17 : f32 to vector<8x128xf32>
    %163 = arith.subf %75, %162 : vector<8x128xf32>
    %164 = vector.broadcast %19 : f32 to vector<8x128xf32>
    %165 = arith.subf %79, %164 : vector<8x128xf32>
    %166 = arith.mulf %163, %163 : vector<8x128xf32>
    %167 = arith.mulf %165, %165 : vector<8x128xf32>
    %168 = arith.addf %166, %167 : vector<8x128xf32>
    %cst_11 = arith.constant 9.99999971E-10 : f32
    %169 = vector.broadcast %cst_11 : f32 to vector<8x128xf32>
    %170 = arith.addf %168, %169 : vector<8x128xf32>
    %171 = math.log %170 : vector<8x128xf32>
    %172 = arith.mulf %168, %171 : vector<8x128xf32>
    %173 = vector.broadcast %37 : f32 to vector<8x128xf32>
    %174 = arith.mulf %172, %173 : vector<8x128xf32>
    %175 = arith.addf %158, %174 : vector<8x128xf32>
    %176 = vector.broadcast %39 : f32 to vector<8x128xf32>
    %177 = arith.mulf %172, %176 : vector<8x128xf32>
    %178 = arith.addf %161, %177 : vector<8x128xf32>
    %c8_i32 = arith.constant 8 : i32
    %179 = arith.muli %c0_i32, %c8_i32 : i32
    %180 = tpu.assume_multiple %179, 8 : i32
    %181 = arith.index_cast %180 : i32 to index
    %c0_12 = arith.constant 0 : index
    %182 = vector.load %arg5[%181, %c0_12] : memref<8x256xf32, #tpu.memory_space<vmem>>, vector<8x128xf32>
    tpu.vector_store %arg5[%181, %c0_12], %175 {strides = array<i32>} : memref<8x256xf32, #tpu.memory_space<vmem>>, vector<8x128xf32>,
    %183 = arith.index_cast %180 : i32 to index
    %c128 = arith.constant 128 : index
    %184 = vector.load %arg5[%183, %c128] : memref<8x256xf32, #tpu.memory_space<vmem>>, vector<8x128xf32>
    tpu.vector_store %arg5[%183, %c128], %178 {strides = array<i32>} : memref<8x256xf32, #tpu.memory_space<vmem>>, vector<8x128xf32>,
    %c1_i32 = arith.constant 1 : i32
    %c0_13 = arith.constant 0 : index
    %c0_14 = arith.constant 0 : index
    %185 = vector.load %arg5[%c0_13, %c0_14] : memref<8x256xf32, #tpu.memory_space<vmem>>, vector<8x256xf32>
    %c0_15 = arith.constant 0 : index
    %c0_16 = arith.constant 0 : index
    %186 = vector.load %arg3[%c0_15, %c0_16] : memref<256x256xf32, #tpu.memory_space<vmem>>, vector<256x256xf32>
    %cst_17 = arith.constant dense<0.000000e+00> : vector<8x256xf32>
    %187 = tpu.matmul %185, %186, %cst_17 {dimension_numbers = #tpu.dot_dimension_numbers<[1], [0], [0], [1], [0, 0, 1, 1], [], []>, precision = #tpu.contract_precision<fp32>} : vector<8x256xf32>, vector<256x256xf32>, vector<8x256xf32> -> vector<8x256xf32>
    %c0_18 = arith.constant 0 : index
    %c0_19 = arith.constant 0 : index
    %c0_20 = arith.constant 0 : index
    %188 = vector.load %arg4[%c0_18, %c0_19, %c0_20] : memref<1x8x256xf32, #tpu.memory_space<vmem>>, vector<1x8x256xf32>
    %189 = vector.shape_cast %188 : vector<1x8x256xf32> to vector<8x256xf32>
    %190 = vector.shape_cast %187 : vector<8x256xf32> to vector<1x8x256xf32>
    tpu.vector_store %arg4[%c0_18, %c0_19, %c0_20], %190 {strides = array<i32>} : memref<1x8x256xf32, #tpu.memory_space<vmem>>, vector<1x8x256xf32>,
    return
  }
  func.func @transform_0(%arg0: i32, %arg1: i32) -> (i32, i32) {
    %c0_i32 = arith.constant 0 : i32
    %c0_i32_0 = arith.constant 0 : i32
    %c0_i32_1 = arith.constant 0 : i32
    return %c0_i32, %c0_i32_0 : i32, i32
  }
  func.func @transform_1(%arg0: i32, %arg1: i32) -> (i32, i32) {
    %c0_i32 = arith.constant 0 : i32
    %c0_i32_0 = arith.constant 0 : i32
    %c0_i32_1 = arith.constant 0 : i32
    return %c0_i32, %c0_i32_0 : i32, i32
  }
  func.func @transform_2(%arg0: i32, %arg1: i32) -> (i32, i32, i32) {
    %c0_i32 = arith.constant 0 : i32
    %c0_i32_0 = arith.constant 0 : i32
    return %arg0, %arg1, %c0_i32 : i32, i32, i32
  }
}

</mosaic_0001>

<bundles_post_ra>
// kernel: custom-call.8
= control target key start
LH: loop header
LB: loop body
LE: loop exit
PB: predicated region body
PF: predicated region fallthrough
CT: control target
= control target key end

     0   :  { %5 = vsyncpa [#allocation4], 0  ;;  %s888_s0 = inlined_call_operand.vmem [shape: f32[2,8,8], index: 0, kind: input, shape index: {}]   ;;  %s889_s1 = inlined_call_operand.vmem [shape: f32[2,8,8], index: 1, kind: output, shape index: {0}]   ;;  %s890_s2 = inlined_call_operand.hbm [shape: s32[2,8], index: 2, kind: output, shape index: {1}]   ;;  %s891_s3 = inlined_call_operand.vmem [shape: s32[2,8], index: 3, kind: output, shape index: {2}]  }
   0x1   :  { %7 = vsyncpa [#allocation4 + $0x1], 0  ;;  %s707_s12 = smov 0   ;;  %s709_s13 = smov 0  }
   0x2   :  { %s711_s14 = smov 0   ;;  %s713_s15 = smov 0  }
   0x3 LB: > { %s728_s16 = sadd.s32 4294967295, %s679_s15   ;;  %s542_s17 = sadd.s32 4294967294, %s679_s15   ;;  %s679_s15 = sphi %s713_s15, %s899_s15   ;;  %s675_s14 = sphi %s711_s14, %s898_s14   ;;  %s671_s13 = sphi %s709_s13, %s897_s13   ;;  %s667_s12 = sphi %s707_s12, %s896_s12  }
   0x4   : > { %s732_s18 = sadd.s32 1, %s679_s15   ;;  %s17_s19 = sshrl.u32 %s679_s15, 3 }
   0x5   : > { %s18_s20 = sshrl.u32 %s732_s18, 3  ;;  %s22_s21 = sadd.s32 1, %s675_s14 }
   0x6   : > { %s19_s22 = ssub.s32 %s17_s19, %s18_s20  ;;  %p32_p0 = scmp.ne.s32.totalorder %s675_s14, %s671_s13 }
   0x7   : > { %p20_p1 = scmp.eq.s32.totalorder %s19_s22, 0  ;;  %p33_p2 = scmp.eq.s32.totalorder %s728_s16, 1 }
   0x8   : > { %p38_p3 = scmp.ne.s32.totalorder %s671_s13, %s667_s12  ;;  %p39_p4 = scmp.eq.s32.totalorder %s542_s17, 1 }
   0x9   : > { %s743_s23 = scalar_select %p20_p1, %s675_s14, %s22_s21  }
   0xa   : > { %p745_p5 = por %p33_p2, %p32_p0  ;;  %p749_p6 = por %p39_p4, %p38_p3 }
   0xb   : > { %p544_p7 = scmp.ge.s32.totalorder %s679_s15, 2 }
   0xc   : > { %s85_s26 = sand.u32 (!%p544_p7), 1, %s679_s15   ;;  %s546_s27 = sshll.u32 (!%p544_p7), %s679_s15, 3 }
   0xd   : > { %83 = sbr.rel (%p544_p7) target bundleno = 20 (0x14), region = 16  ;;  %s545_s28 = sshll.u32 (!%p544_p7), %s85_s26, 3 }
   0xe   : > { %s89_s4 = scalar_lea.vmem (!%p544_p7), %s888_s0, %s546_s27  ;;  %s87_s5 = scalar_lea.vmem (!%p544_p7), [#allocation0], %s545_s28 }
   0xf   : > { %v117_v0 = vld [vmem:[%s89_s4] sm:$0xff] (!%p544_p7) }
  0x10   : > { %118 = vst [vmem:[%s87_s5] sm:$0xff] (!%p544_p7), %v117_v0 }
  0x14 PF: > { %p547_p8 = scmp.ge.s32.totalorder %s679_s15, 1  ;;  %p123_p9 = scmp.lt.s32.totalorder %s679_s15, 3 }
  0x16   : > { %p124_p10 = pnand %p547_p8, %p123_p9 }
  0x18   : > { %127 = sbr.rel (%p124_p10) target bundleno = 441 (0x1b9), region = 54 }
  0x1f   : > { %s130_s6 = sand.u32 1, %s728_s16   ;;  %s145_s7 = sand.u32 1, %s671_s13   ;;  %v163_v1 = vlaneseq  ;;  %v685_v4 = vmov 0  }
  0x20   : > { %s548_s8 = sshll.u32 %s130_s6, 3  ;;  %s767_s9 = sshll.u32 %s145_s7, 1 }
  0x21   : > { %v770_v2 = vshrl.u32 %v163_v1, 7  ;;  %s132_s10 = scalar_lea.vmem [#allocation0], %s548_s8  ;;  %s772_s11 = scalar_lea.vmem [#allocation1], %s548_s8 }
  0x22   : > { %v156_v3 = vld [vmem:[%s132_s10] sm:$0xff]  ;;  %s158_s17 = sand.u32 7, %s728_s16   ;;  %s147_s20 = scalar_lea.vmem [#allocation3], %s767_s9 }
  0x23   : > { %157 = vst [vmem:[%s772_s11] sm:$0xff] %v156_v3  ;;  %167 = vst [vmem:[#allocation7] sm:$0xff] %v770_v2  ;;  %s777_s19 = scalar_lea.vmem [#allocation2], %s158_s17  ;;  %s153_s21 = scalar_lea.vmem [#allocation6], %s767_s9 }
  0x24   : > { %162 = vst [vmem:[%s777_s19] sm:$0x1] %v685_v4  ;;  %s782_s22 = scalar_lea.vmem [#allocation5], %s158_s17  ;;  %s784_s26 = smov 0  }
  0x25 LB: >> { %v791_v7 = vstv %s683_s26  ;;  %s224_s27 = ssub.s32 128, %s683_s26  ;;  %v230_v37 = vand.u32 127, %v163_v1  ;;  %s236_s28 = scalar_lea.vmem %s772_s11, %s683_s26 [#allocation1]  ;;  %s683_s26 = sphi %s784_s26, %s173_s26  }
  0x26   : >> { %vm182_vm0 = vcmp.ge.s32.totalorder %v770_v2, %v791_v7  ;;  %s242_s30 = scalar_lea.vmem [#allocation7], %s683_s26  ;;  %vm262_vm13 = vcmp.gt.s32.totalorder %v770_v2, %v791_v7  ;;  %s173_s26 = sadd.s32 1, %s683_s26  }
  0x27   : >> { %vm254_vm10 = vcmp.gt.s32.totalorder %v230_v37, %v791_v7  ;;  %vm231_vm11 = vcmp.eq.s32.totalorder %v230_v37, %v791_v7  ;;  %p170_p11 = scmp.ge.s32.totalorder %s173_s26, 8  }
  0x28   : >> { %vm266_vm15 = vmand %vm262_vm13, %vm231_vm11  ;;  %s892_s6 = sshrl.u32 (%p170_p11), %s728_s16, 3  ;;  %s556_s8 = sshll.u32 (%p170_p11), %s728_s16, 3 }
  0x29   : > { %s557_s10 = sshll.u32 (%p170_p11), %s892_s6, 5  ;;  %s686_s6 = smov (%p170_p11), [#allocation3]  }
  0x2a   : >> { %v178_v5 = vld [vmem:[%s772_s11] sm:$0xff]  ;;  %v238_v40 = vld [vmem:[%s236_s28] ss:$0 sm:$0xff]  ;;  %s617_s17 = sshll.u32 (%p170_p11), %s686_s6, 4  ;;  %s618_s17 = int_to_ptr.vmem [resolvable:$false] %s617_s17 }
  0x2b   : >> { %v179_v6 = vand.u32 2147483647, %v178_v5  ;;  %v233_v39 = vld [vmem:[%s777_s19] ss:$0 sm:$0xff] }
  0x2c   : >> { %v244_v41 = vld [vmem:[%s242_s30] ss:$0 sm:$0xff] }
  0x2d   : >> { %vm552_vm1 = vcmp.gt.f32.partialorder %v179_v6, -inf }
  0x2e   : >> { %vm186_vm2 = vmand %vm182_vm0, %vm552_vm1 }
  0x2f   : >> { %v187_v8 = vsel %vm186_vm2, %v770_v2, %v791_v7  ;;  %v188_v9 = vsel %vm186_vm2, %v179_v6, -inf }
  0x30   : >> { %v189_v10 = vrot.slane %v188_v9, 1  ;;  %v190_v11 = vrot.slane %v187_v8, 1 }
  0x32   : >> { %vm191_vm3 = vcmp.ge.f32.partialorder %v189_v10, %v188_v9  ;;  %v194_v12 = vrot.slane %v189_v10, 1  ;;  %v195_v13 = vrot.slane %v190_v11, 1 }
  0x33   : >> { %v192_v14 = vsel %vm191_vm3, %v189_v10, %v188_v9  ;;  %v193_v15 = vsel %vm191_vm3, %v190_v11, %v187_v8 }
  0x34   : >> { %vm196_vm4 = vcmp.ge.f32.partialorder %v194_v12, %v192_v14  ;;  %v199_v16 = vrot.slane %v194_v12, 1  ;;  %v200_v17 = vrot.slane %v195_v13, 1 }
  0x35   : >> { %v197_v18 = vsel %vm196_vm4, %v194_v12, %v192_v14  ;;  %v198_v19 = vsel %vm196_vm4, %v195_v13, %v193_v15 }
  0x36   : >> { %vm201_vm5 = vcmp.ge.f32.partialorder %v199_v16, %v197_v18  ;;  %v204_v20 = vrot.slane %v199_v16, 1  ;;  %v205_v21 = vrot.slane %v200_v17, 1 }
  0x37   : >> { %v202_v22 = vsel %vm201_vm5, %v199_v16, %v197_v18  ;;  %v203_v23 = vsel %vm201_vm5, %v200_v17, %v198_v19 }
  0x38   : >> { %vm206_vm6 = vcmp.ge.f32.partialorder %v204_v20, %v202_v22  ;;  %v209_v24 = vrot.slane %v204_v20, 1  ;;  %v210_v25 = vrot.slane %v205_v21, 1 }
  0x39   : >> { %v207_v26 = vsel %vm206_vm6, %v204_v20, %v202_v22  ;;  %v208_v27 = vsel %vm206_vm6, %v205_v21, %v203_v23 }
  0x3a   : >> { %vm211_vm7 = vcmp.ge.f32.partialorder %v209_v24, %v207_v26  ;;  %v214_v28 = vrot.slane %v209_v24, 1  ;;  %v215_v29 = vrot.slane %v210_v25, 1 }
  0x3b   : >> { %v212_v30 = vsel %vm211_vm7, %v209_v24, %v207_v26  ;;  %v213_v31 = vsel %vm211_vm7, %v210_v25, %v208_v27 }
  0x3c   : >> { %vm216_vm8 = vcmp.ge.f32.partialorder %v214_v28, %v212_v30  ;;  %v219_v32 = vrot.slane %v214_v28, 1  ;;  %v220_v33 = vrot.slane %v215_v29, 1 }
  0x3d   : >> { %v217_v34 = vsel %vm216_vm8, %v214_v28, %v212_v30  ;;  %v218_v35 = vsel %vm216_vm8, %v215_v29, %v213_v31 }
  0x3e   : >> { %vm221_vm9 = vcmp.ge.f32.partialorder %v219_v32, %v217_v34 }
  0x3f   : >> { %v223_v36 = vsel %vm221_vm9, %v220_v33, %v218_v35 }
  0x40   : >> { %225 = vrot.lane.b32.xlu0 %v223_v36, %s224_s27 }
  0xb2   : >> { %v226_v38 = vpop.permute.xlu0 %225 }
  0xb3   : >> { %561 = vpush %v226_v38 }
  0xe4   : >> { %s562_s29 = spop %561 }
  0xe5   : >> { %v232_v42 = vstv %s562_s29  ;;  %s237_s4 = scalar_lea.vmem %s772_s11, %s562_s29 [#allocation1]  ;;  %s243_s5 = scalar_lea.vmem [#allocation7], %s562_s29 }
  0xe6   : >> { %v239_v43 = vld [vmem:[%s237_s4] ss:$0 sm:$0xff]  ;;  %v234_v45 = vsel %vm231_vm11, %v232_v42, %v233_v39  ;;  %s835_s29 = scalar_lea.hbm (%p170_p11), %s890_s2, %s557_s10 }
  0xe7   : >> { %v245_v44 = vld [vmem:[%s243_s5] ss:$0 sm:$0xff]  ;;  %240 = vst [vmem:[%s237_s4] sm:$0x1] %v238_v40  ;;  %vm248_vm12 = vcmp.ne.f32.partialorder %v239_v43, 0.0  ;;  %235 = vst [vmem:[%s777_s19] sm:$0x1] %v234_v45  ;;  %v255_v52 = vsel %vm254_vm10, %v239_v43, 0.0  ;;  %s348_s19 = scalar_lea.vmem (%p170_p11), %s889_s1, %s556_s8 }
  0xe8   : >> { %246 = vst [vmem:[%s243_s5] sm:$0x1] %v244_v41  ;;  %241 = vst [vmem:[%s236_s28] sm:$0x1] %v239_v43  ;;  %s339_s4 = scalar_lea.sflag (%p170_p11), [#allocation4], %s145_s7 }
  0xe9   : >> { %247 = vst [vmem:[%s242_s30] sm:$0x1] %v245_v44  ;;  %vm249_vm14 = vmand %vm231_vm11, %vm248_vm12  ;;  %s391_s30 = sshll.u32 (%p170_p11), %s147_s20, 4  ;;  %s392_s30 = int_to_ptr.vmem [resolvable:$true] %s391_s30 }
  0xea   : >> { %v250_v46 = vsel %vm249_vm14, %v239_v43, 1.0  ;;  %s613_s5 = scalar_lea.vmem (%p170_p11), %s392_s30, 32  ;;  %p620_p1 = scmp.lt.s32.totalorder (%p170_p11), %s392_s30, %s618_s17 }
  0xeb   : >> { %v263_v47 = vsel %vm262_vm13, %v250_v46, 1.0  ;;  %p614_p12 = scmp.ne.s32.totalorder (%p170_p11), %s392_s30, %s613_s5 }
  0xec   : >> { %611 = vrcp.f32 %v263_v47 }
  0xed   : > { %p615_p13 = pnand (%p170_p11), %p614_p12, %p745_p5 }
  0xee   : > { %v325_v57 = vld [vmem:[#allocation2] sm:$0x3] (%p170_p11) }
  0xef   : >> { %v259_v49 = vld [vmem:[%s772_s11] sm:$0xff]  ;;  %327 = vst [vmem:[%s147_s20] sm:$0x3] (%p170_p11), %v325_v57  ;;  %p616_p0 = pneg (%p170_p11), %p615_p13 }
  0xf0   : > { %v273_v56 = vld [vmem:[#allocation7] sm:$0xff] (%p170_p11) }
  0xf6   : >> { %v612_v48 = vpop.eup %611 }
  0xf7   : >> { %v265_v50 = vmul.f32 %v612_v48, %v259_v49 }
  0xf9   : >> { %v267_v51 = vsel %vm266_vm15, %v265_v50, 0.0 }
  0xfa   : >> { %268 = vadd.xlane.f32.xlu0 %v267_v51 }
 0x127   : > { %289 = vxpose.xlu0.b32.start.end [1/1] (short) (narrow) (%p170_p11), %v273_v56, 8 }
 0x186   : > { %172 = sbr.rel (!%p170_p11) target bundleno = 37 (0x25), region = 210 }
 0x187   : >> { %v269_v53 = vpop.xlane.xlu0 %268 }
 0x188   : >> { %v270_v54 = vmul.f32 %v269_v53, %v255_v52 }
 0x18a   : >> { %v271_v55 = vsub.f32 %v265_v50, %v270_v54 }
 0x18c   : >> { %272 = vst [vmem:[%s772_s11] sm:$0xff] %v271_v55 }
 0x193   : > { %v376_v58 = vld [vmem:[%s772_s11] sm:$0xff]  ;;  %s619_s11 = scalar_lea.vmem %s618_s17, 64 }
 0x194   : > { %377 = vst [vmem:[%s348_s19] sm:$0xff] %v376_v58  ;;  %p621_p2 = scmp.lt.s32.totalorder %s619_s11, %s613_s5 }
 0x196   : > { %p622_p3 = por %p621_p2, %p620_p1 }
 0x198   : > { %p623_p4 = pnand %p622_p3, %p616_p0 }
 0x19a   : > { %626 = shalt.err (!%p623_p4)
}
 0x19b   : > { %s627_s7 = scalar_lea.hbm %s835_s29, 32  ;;  %s631_s6 = scalar_lea.hbm %s890_s2, 32 }
 0x19c   : > { %p628_p8 = scmp.ne.s32.totalorder %s835_s29, %s627_s7  ;;  %p632_p11 = scmp.lt.u32.totalorder %s835_s29, %s890_s2 }
 0x19d   : > { %p633_p12 = scmp.lt.u32.totalorder %s631_s6, %s627_s7  ;;  %p635_p0 = scmp.lt.u32.totalorder %s627_s7, %s835_s29 }
 0x19e   : > { %p629_p9 = pnand %p628_p8, %p745_p5 }
 0x19f   : > { %p634_p13 = por %p633_p12, %p632_p11 }
 0x1a0   : > { %p630_p10 = pneg %p629_p9 }
 0x1a1   : > { %p636_p1 = por %p635_p0, %p634_p13 }
 0x1a3   : > { %p637_p2 = pnand %p636_p1, %p630_p10 }
 0x1a5   : > { %640 = shalt.err (!%p637_p2)
}
 0x1a6   : > { %563 = dma.vmem_to_hbm [thread:$0]  (%p745_p5), %s392_s30, 32, %s835_s29, %s339_s4  }
 0x1a7   : > { %v305_v59 = vpop.trf.xlu0  ;;  %s895_s19 = sshrl.u32 (%p745_p5), %s728_s16, 3 }
 0x1a8   : > { %321 = vst [vmem:[%s782_s22] sm:$0x1] %v305_v59  ;;  %s558_s27 = sshll.u32 (%p745_p5), %s895_s19, 1 }
 0x1a9   : > { %s400_s17 = scalar_lea.vmem (%p745_p5), %s891_s3, %s558_s27 }
 0x1aa   : > { %397 = sbr.rel (!%p745_p5) target bundleno = 441 (0x1b9), region = 104 }
 0x1af   : > { %v331_v60 = vld [vmem:[#allocation5] sm:$0x3] }
 0x1b0   : > { %333 = vst [vmem:[%s153_s21] sm:$0x3] %v331_v60 }
 0x1b7   : > { %v416_v61 = vld [vmem:[%s153_s21] sm:$0x3] }
 0x1b8   : > { %417 = vst [vmem:[%s400_s17] sm:$0x3] %v416_v61 }
 0x1b9 PF: > { %s444_s22 = sand.u32 1, %s667_s12   ;;  %p566_p5 = pnand %p544_p7, %p749_p6 }
 0x1ba   : > { %s445_s24 = scalar_lea.sflag [#allocation4], %s444_s22 }
 0x1bb   : > { %662 = dma.done.wait (!%p566_p5), %s445_s24, 32  }
 0x1bc   : > { %664 = vsyncadd (!%p566_p5), %s445_s24, 4294967264  ;;  %p10_p3 = scmp.ge.s32.totalorder %s732_s18, 4   ;;  %s896_s12 = smov %s671_s13 }
 0x1bd   : > { %s897_s13 = smov %s675_s14  ;;  %s898_s14 = smov %s743_s23 }
 0x1be   : > { %s899_s15 = smov %s732_s18  ;;  %12 = sbr.rel (!%p10_p3) target bundleno = 3 (0x3), region = 221 }
 0x1c5   :  { %457 = vsyncpa [#allocation4], 1 }
 0x1c6   :  { %459 = vsyncpa [#allocation4 + $0x1], 1 }

// kernel: custom-call.9
= control target key start
LH: loop header
LB: loop body
LE: loop exit
PB: predicated region body
PF: predicated region fallthrough
CT: control target
= control target key end

     0   :  { %s384_s6 = smov 0   ;;  %s386_s7 = smov 0   ;;  %s442_s0 = inlined_call_operand.vmem [shape: f32[2,1,8,8], index: 0, kind: input, shape index: {}]   ;;  %s443_s1 = inlined_call_operand.vmem [shape: f32[2,1,8,8], index: 1, kind: output, shape index: {}]  }
   0x1   :  { %s388_s8 = smov 0  }
   0x2 LB: > { %s310_s9 = sadd.s32 4294967295, %s371_s8   ;;  %s33_s10 = sadd.s32 1, %s367_s7  ;;  %s371_s8 = sphi %s388_s8, %s7_s8   ;;  %s367_s7 = sphi %s386_s7, %s445_s7   ;;  %s363_s6 = sphi %s384_s6, %s444_s6  }
   0x3   : > { %p35_p0 = scmp.ge.s32.totalorder %s33_s10, 2  ;;  %p312_p1 = scmp.ge.s32.totalorder %s371_s8, 2 }
   0x4   : > { %s49_s11 = sand.u32 (!%p312_p1), 1, %s371_s8   ;;  %s314_s12 = sshll.u32 (!%p312_p1), %s367_s7, 3 }
   0x5   : > { %s447_s10 = smov (%p35_p0, %s33_s10), 0  ;;  %47 = sbr.rel (%p312_p1) target bundleno = 12 (0xc), region = 16 }
   0x6   : > { %s313_s13 = sshll.u32 (!%p312_p1), %s49_s11, 3  ;;  %s56_s16 = scalar_lea.vmem (!%p312_p1), %s442_s0, %s314_s12 }
   0x7   : > { %v84_v0 = vld [vmem:[%s56_s16] sm:$0xff] (!%p312_p1)  ;;  %s51_s17 = scalar_lea.vmem (!%p312_p1), [#allocation0], %s313_s13 }
   0x8   : > { %85 = vst [vmem:[%s51_s17] sm:$0xff] (!%p312_p1), %v84_v0 }
   0xc PF: > { %p315_p2 = scmp.ge.s32.totalorder %s371_s8, 1  ;;  %p90_p3 = scmp.lt.s32.totalorder %s371_s8, 3 }
   0xe   : > { %p91_p4 = pnand %p315_p2, %p90_p3 }
  0x10   : > { %94 = sbr.rel (%p91_p4) target bundleno = 1213 (0x4bd), region = 54 }
  0x17   : > { %s97_s18 = sand.u32 1, %s310_s9   ;;  %v108_v1 = vlaneseq  ;;  %v373_v10 = vmov -1.0   ;;  %s319_s21 = sshll.u32 %s363_s6, 3 }
  0x18   : > { %s316_s19 = sshll.u32 %s97_s18, 3  ;;  %s218_s24 = scalar_lea.vmem %s443_s1, %s319_s21 }
  0x19   : > { %v411_v2 = vand.u32 127, %v108_v1  ;;  %v112_v3 = vshrl.u32 %v108_v1, 7  ;;  %s99_s20 = scalar_lea.vmem [#allocation0], %s316_s19 }
  0x1a   : > { %v115_v4 = vld [vmem:[%s99_s20] sm:$0xff] }
  0x1b   : > { %vm110_vm0 = vcmp.lt.s32.totalorder %v411_v2, 8  ;;  %vm114_vm1 = vcmp.eq.s32.totalorder %v112_v3, %v411_v2  ;;  %vm119_vm2 = vcmp.le.s32.totalorder %v112_v3, %v411_v2  ;;  %vm133_vm4 = vcmp.eq.s32.totalorder %v411_v2, 7 }
  0x1c   : > { %v116_v5 = vsel %vm114_vm1, %v115_v4, 0.0  ;;  %vm120_vm3 = vmand %vm119_vm2, %vm110_vm0  ;;  %vm130_vm5 = vcmp.eq.s32.totalorder %v411_v2, %v112_v3  ;;  %v134_v11 = vsel %vm133_vm4, 1.0, %v373_v10  ;;  %vm141_vm6 = vcmp.eq.s32.totalorder %v411_v2, 6 }
  0x1d   : > { %v121_v6 = vsel %vm120_vm3, %v115_v4, 0.0  ;;  %117 = vadd.xlane.f32.xlu0 %v116_v5  ;;  %v135_v12 = vsel %vm130_vm5, %v134_v11, 0.0  ;;  %vm151_vm7 = vcmp.eq.s32.totalorder %v411_v2, 5  ;;  %vm161_vm8 = vcmp.eq.s32.totalorder %v411_v2, 4 }
  0x1e   : > { %vm171_vm9 = vcmp.eq.s32.totalorder %v411_v2, 3  ;;  %vm181_vm10 = vcmp.eq.s32.totalorder %v411_v2, 2  ;;  %vm191_vm11 = vcmp.eq.s32.totalorder %v411_v2, 1  ;;  %vm200_vm12 = vcmp.eq.s32.totalorder %v411_v2, 0 }
  0xaa   : > { %v416_v7 = vpop.xlane.xlu0 %117 }
  0xab   : > { %347 = vrcp.f32 %v416_v7  ;;  %vm207_vm13 = vweird.f32 %v416_v7 }
  0xb5   : > { %v348_v8 = vpop.eup %347 }
  0xb6   : > { %v123_v9 = vmul.f32 %v348_v8, %v121_v6 }
  0xb8   : > { %124 = vst [vmem:[#allocation2] sm:$0xff] %v123_v9 }
  0xbf   : > { %v137_v13 = vld [vmem:[#allocation2 + $0x6] ss:$0 sm:$0xff]  ;;  %v147_v16 = vld [vmem:[#allocation2 + $0x5] ss:$0 sm:$0xff]  ;;  %v157_v21 = vld [vmem:[#allocation2 + $0x4] ss:$0 sm:$0xff] }
  0xc0   : > { %v138_v14 = vxor.u32 2147483648, %v137_v13  ;;  %v148_v18 = vxor.u32 2147483648, %v147_v16  ;;  %v158_v23 = vxor.u32 2147483648, %v157_v21  ;;  %v167_v26 = vld [vmem:[#allocation2 + $0x3] ss:$0 sm:$0xff] }
  0xc1   : > { %v168_v28 = vxor.u32 2147483648, %v167_v26  ;;  %v177_v31 = vld [vmem:[#allocation2 + $0x2] ss:$0 sm:$0xff]  ;;  %v187_v36 = vld [vmem:[#allocation2 + $0x1] ss:$0 sm:$0xff] }
  0xc2   : > { %v142_v15 = vmul.f32 %v138_v14, %v135_v12  ;;  %v178_v33 = vxor.u32 2147483648, %v177_v31  ;;  %v188_v38 = vxor.u32 2147483648, %v187_v36  ;;  %v196_v41 = vld [vmem:[#allocation2] ss:$0 sm:$0xff] }
  0xc3   : > { %v197_v43 = vxor.u32 2147483648, %v196_v41 }
  0xc4   : > { %143 = vadd.xlane.f32.xlu0 %v142_v15 }
 0x151   : > { %v144_v17 = vpop.xlane.xlu0 %143 }
 0x152   : > { %v145_v19 = vsel %vm141_vm6, %v144_v17, %v135_v12 }
 0x153   : > { %v152_v20 = vmul.f32 %v148_v18, %v145_v19 }
 0x155   : > { %153 = vadd.xlane.f32.xlu1 %v152_v20 }
 0x1e2   : > { %v154_v22 = vpop.xlane.xlu1 %153 }
 0x1e3   : > { %v155_v24 = vsel %vm151_vm7, %v154_v22, %v145_v19 }
 0x1e4   : > { %v162_v25 = vmul.f32 %v158_v23, %v155_v24 }
 0x1e6   : > { %163 = vadd.xlane.f32.xlu1 %v162_v25 }
 0x273   : > { %v164_v27 = vpop.xlane.xlu1 %163 }
 0x274   : > { %v165_v29 = vsel %vm161_vm8, %v164_v27, %v155_v24 }
 0x275   : > { %v172_v30 = vmul.f32 %v168_v28, %v165_v29 }
 0x277   : > { %173 = vadd.xlane.f32.xlu0 %v172_v30 }
 0x304   : > { %v174_v32 = vpop.xlane.xlu0 %173 }
 0x305   : > { %v175_v34 = vsel %vm171_vm9, %v174_v32, %v165_v29 }
 0x306   : > { %v182_v35 = vmul.f32 %v178_v33, %v175_v34 }
 0x308   : > { %183 = vadd.xlane.f32.xlu1 %v182_v35 }
 0x395   : > { %v184_v37 = vpop.xlane.xlu1 %183 }
 0x396   : > { %v185_v39 = vsel %vm181_vm10, %v184_v37, %v175_v34 }
 0x397   : > { %v192_v40 = vmul.f32 %v188_v38, %v185_v39 }
 0x399   : > { %193 = vadd.xlane.f32.xlu0 %v192_v40 }
 0x426   : > { %v194_v42 = vpop.xlane.xlu0 %193 }
 0x427   : > { %v195_v44 = vsel %vm191_vm11, %v194_v42, %v185_v39 }
 0x428   : > { %v201_v45 = vmul.f32 %v197_v43, %v195_v44 }
 0x42a   : > { %202 = vadd.xlane.f32.xlu1 %v201_v45 }
 0x4b7   : > { %v203_v46 = vpop.xlane.xlu1 %202 }
 0x4b8   : > { %v204_v47 = vsel %vm200_vm12, %v203_v46, %v195_v44 }
 0x4b9   : > { %v206_v48 = vmul.f32 %v348_v8, %v204_v47 }
 0x4bb   : > { %v208_v49 = vsel %vm207_vm13, %v204_v47, %v206_v48 }
 0x4bc   : > { %247 = vst [vmem:[%s218_s24] sm:$0xff] %v208_v49 }
 0x4bd PF: > { %s7_s8 = sadd.s32 1, %s371_s8   ;;  %s444_s6 = smov %s367_s7 }
 0x4be   : > { %p4_p5 = scmp.ge.s32.totalorder %s7_s8, 4   ;;  %s445_s7 = smov %s447_s10 }
 0x4c0   :  { %6 = sbr.rel (!%p4_p5) target bundleno = 2 (0x2), region = 124 }

// kernel: custom-call.10
= control target key start
LH: loop header
LB: loop body
LE: loop exit
PB: predicated region body
PF: predicated region fallthrough
CT: control target
= control target key end

     0   :  { %s385_s6 = smov 0   ;;  %s387_s7 = smov 0   ;;  %s443_s0 = inlined_call_operand.vmem [shape: f32[2,1,8,8], index: 0, kind: input, shape index: {}]   ;;  %s444_s1 = inlined_call_operand.vmem [shape: f32[2,1,8,8], index: 1, kind: output, shape index: {}]  }
   0x1   :  { %s389_s8 = smov 0  }
   0x2 LB: > { %s311_s9 = sadd.s32 4294967295, %s372_s8   ;;  %s33_s10 = sadd.s32 1, %s368_s7  ;;  %s372_s8 = sphi %s389_s8, %s7_s8   ;;  %s368_s7 = sphi %s387_s7, %s446_s7   ;;  %s364_s6 = sphi %s385_s6, %s445_s6  }
   0x3   : > { %p35_p0 = scmp.ge.s32.totalorder %s33_s10, 2  ;;  %p313_p1 = scmp.ge.s32.totalorder %s372_s8, 2 }
   0x4   : > { %s49_s11 = sand.u32 (!%p313_p1), 1, %s372_s8   ;;  %s315_s12 = sshll.u32 (!%p313_p1), %s368_s7, 3 }
   0x5   : > { %s448_s10 = smov (%p35_p0, %s33_s10), 0  ;;  %47 = sbr.rel (%p313_p1) target bundleno = 12 (0xc), region = 16 }
   0x6   : > { %s314_s13 = sshll.u32 (!%p313_p1), %s49_s11, 3  ;;  %s56_s16 = scalar_lea.vmem (!%p313_p1), %s443_s0, %s315_s12 }
   0x7   : > { %v84_v0 = vld [vmem:[%s56_s16] sm:$0xff] (!%p313_p1)  ;;  %s51_s17 = scalar_lea.vmem (!%p313_p1), [#allocation0], %s314_s13 }
   0x8   : > { %85 = vst [vmem:[%s51_s17] sm:$0xff] (!%p313_p1), %v84_v0 }
   0xc PF: > { %p316_p2 = scmp.ge.s32.totalorder %s372_s8, 1  ;;  %p90_p3 = scmp.lt.s32.totalorder %s372_s8, 3 }
   0xe   : > { %p91_p4 = pnand %p316_p2, %p90_p3 }
  0x10   : > { %94 = sbr.rel (%p91_p4) target bundleno = 1213 (0x4bd), region = 54 }
  0x17   : > { %s97_s18 = sand.u32 1, %s311_s9   ;;  %v108_v1 = vlaneseq  ;;  %v374_v10 = vmov -1.0   ;;  %s320_s21 = sshll.u32 %s364_s6, 3 }
  0x18   : > { %s317_s19 = sshll.u32 %s97_s18, 3  ;;  %s219_s24 = scalar_lea.vmem %s444_s1, %s320_s21 }
  0x19   : > { %v412_v2 = vand.u32 127, %v108_v1  ;;  %v112_v3 = vshrl.u32 %v108_v1, 7  ;;  %s99_s20 = scalar_lea.vmem [#allocation0], %s317_s19 }
  0x1a   : > { %v115_v4 = vld [vmem:[%s99_s20] sm:$0xff] }
  0x1b   : > { %vm110_vm0 = vcmp.lt.s32.totalorder %v412_v2, 8  ;;  %vm114_vm1 = vcmp.eq.s32.totalorder %v112_v3, %v412_v2  ;;  %vm119_vm2 = vcmp.ge.s32.totalorder %v112_v3, %v412_v2  ;;  %vm133_vm4 = vcmp.eq.s32.totalorder %v412_v2, 0 }
  0x1c   : > { %v116_v5 = vsel %vm114_vm1, %v115_v4, 0.0  ;;  %vm120_vm3 = vmand %vm119_vm2, %vm110_vm0  ;;  %vm130_vm5 = vcmp.eq.s32.totalorder %v412_v2, %v112_v3  ;;  %v134_v11 = vsel %vm133_vm4, 1.0, %v374_v10  ;;  %vm141_vm6 = vcmp.eq.s32.totalorder %v412_v2, 1 }
  0x1d   : > { %v121_v6 = vsel %vm120_vm3, %v115_v4, 0.0  ;;  %117 = vadd.xlane.f32.xlu0 %v116_v5  ;;  %v135_v12 = vsel %vm130_vm5, %v134_v11, 0.0  ;;  %vm151_vm7 = vcmp.eq.s32.totalorder %v412_v2, 2  ;;  %vm161_vm8 = vcmp.eq.s32.totalorder %v412_v2, 3 }
  0x1e   : > { %vm171_vm9 = vcmp.eq.s32.totalorder %v412_v2, 4  ;;  %vm181_vm10 = vcmp.eq.s32.totalorder %v412_v2, 5  ;;  %vm191_vm11 = vcmp.eq.s32.totalorder %v412_v2, 6  ;;  %vm201_vm12 = vcmp.eq.s32.totalorder %v412_v2, 7 }
  0xaa   : > { %v417_v7 = vpop.xlane.xlu0 %117 }
  0xab   : > { %348 = vrcp.f32 %v417_v7  ;;  %vm208_vm13 = vweird.f32 %v417_v7 }
  0xb5   : > { %v349_v8 = vpop.eup %348 }
  0xb6   : > { %v123_v9 = vmul.f32 %v349_v8, %v121_v6 }
  0xb8   : > { %124 = vst [vmem:[#allocation2] sm:$0xff] %v123_v9 }
  0xbf   : > { %v137_v13 = vld [vmem:[#allocation2 + $0x1] ss:$0 sm:$0xff]  ;;  %v147_v16 = vld [vmem:[#allocation2 + $0x2] ss:$0 sm:$0xff]  ;;  %v157_v21 = vld [vmem:[#allocation2 + $0x3] ss:$0 sm:$0xff] }
  0xc0   : > { %v138_v14 = vxor.u32 2147483648, %v137_v13  ;;  %v148_v18 = vxor.u32 2147483648, %v147_v16  ;;  %v158_v23 = vxor.u32 2147483648, %v157_v21  ;;  %v167_v26 = vld [vmem:[#allocation2 + $0x4] ss:$0 sm:$0xff] }
  0xc1   : > { %v168_v28 = vxor.u32 2147483648, %v167_v26  ;;  %v177_v31 = vld [vmem:[#allocation2 + $0x5] ss:$0 sm:$0xff]  ;;  %v187_v36 = vld [vmem:[#allocation2 + $0x6] ss:$0 sm:$0xff] }
  0xc2   : > { %v142_v15 = vmul.f32 %v138_v14, %v135_v12  ;;  %v178_v33 = vxor.u32 2147483648, %v177_v31  ;;  %v188_v38 = vxor.u32 2147483648, %v187_v36  ;;  %v197_v41 = vld [vmem:[#allocation2 + $0x7] ss:$0 sm:$0xff] }
  0xc3   : > { %v198_v43 = vxor.u32 2147483648, %v197_v41 }
  0xc4   : > { %143 = vadd.xlane.f32.xlu0 %v142_v15 }
 0x151   : > { %v144_v17 = vpop.xlane.xlu0 %143 }
 0x152   : > { %v145_v19 = vsel %vm141_vm6, %v144_v17, %v135_v12 }
 0x153   : > { %v152_v20 = vmul.f32 %v148_v18, %v145_v19 }
 0x155   : > { %153 = vadd.xlane.f32.xlu1 %v152_v20 }
 0x1e2   : > { %v154_v22 = vpop.xlane.xlu1 %153 }
 0x1e3   : > { %v155_v24 = vsel %vm151_vm7, %v154_v22, %v145_v19 }
 0x1e4   : > { %v162_v25 = vmul.f32 %v158_v23, %v155_v24 }
 0x1e6   : > { %163 = vadd.xlane.f32.xlu1 %v162_v25 }
 0x273   : > { %v164_v27 = vpop.xlane.xlu1 %163 }
 0x274   : > { %v165_v29 = vsel %vm161_vm8, %v164_v27, %v155_v24 }
 0x275   : > { %v172_v30 = vmul.f32 %v168_v28, %v165_v29 }
 0x277   : > { %173 = vadd.xlane.f32.xlu0 %v172_v30 }
 0x304   : > { %v174_v32 = vpop.xlane.xlu0 %173 }
 0x305   : > { %v175_v34 = vsel %vm171_vm9, %v174_v32, %v165_v29 }
 0x306   : > { %v182_v35 = vmul.f32 %v178_v33, %v175_v34 }
 0x308   : > { %183 = vadd.xlane.f32.xlu1 %v182_v35 }
 0x395   : > { %v184_v37 = vpop.xlane.xlu1 %183 }
 0x396   : > { %v185_v39 = vsel %vm181_vm10, %v184_v37, %v175_v34 }
 0x397   : > { %v192_v40 = vmul.f32 %v188_v38, %v185_v39 }
 0x399   : > { %193 = vadd.xlane.f32.xlu0 %v192_v40 }
 0x426   : > { %v194_v42 = vpop.xlane.xlu0 %193 }
 0x427   : > { %v195_v44 = vsel %vm191_vm11, %v194_v42, %v185_v39 }
 0x428   : > { %v202_v45 = vmul.f32 %v198_v43, %v195_v44 }
 0x42a   : > { %203 = vadd.xlane.f32.xlu1 %v202_v45 }
 0x4b7   : > { %v204_v46 = vpop.xlane.xlu1 %203 }
 0x4b8   : > { %v205_v47 = vsel %vm201_vm12, %v204_v46, %v195_v44 }
 0x4b9   : > { %v207_v48 = vmul.f32 %v349_v8, %v205_v47 }
 0x4bb   : > { %v209_v49 = vsel %vm208_vm13, %v205_v47, %v207_v48 }
 0x4bc   : > { %248 = vst [vmem:[%s219_s24] sm:$0xff] %v209_v49 }
 0x4bd PF: > { %s7_s8 = sadd.s32 1, %s372_s8   ;;  %s445_s6 = smov %s368_s7 }
 0x4be   : > { %p4_p5 = scmp.ge.s32.totalorder %s7_s8, 4   ;;  %s446_s7 = smov %s448_s10 }
 0x4c0   :  { %6 = sbr.rel (!%p4_p5) target bundleno = 2 (0x2), region = 125 }

// kernel: tps_forward.1
= control target key start
LH: loop header
LB: loop body
LE: loop exit
PB: predicated region body
PF: predicated region fallthrough
CT: control target
= control target key end

     0   :  { %s3489_s0 = inlined_call_operand.vmem [shape: f32[2,26], index: 0, kind: input, shape index: {}]   ;;  %s3490_s1 = inlined_call_operand.vmem [shape: f32[256,256], index: 1, kind: input, shape index: {}]   ;;  %s3491_s2 = inlined_call_operand.vmem [shape: f32[2,8,256], index: 2, kind: output, shape index: {}]  }
   0x1   :  { %3611 = sst [smem:[#allocation105_spill]] %s3489_s0 }
   0x2   :  { %3612 = sst [smem:[#allocation106_spill]] %s3490_s1 }
   0x3   :  { %3613 = sst [smem:[#allocation107_spill]] %s3491_s2 }
   0x4   :  { %7 = vsyncpa [#allocation4], 0  ;;  %s2284_s9 = smov 0   ;;  %s2286_s10 = smov 0  }
   0x5   :  { %s2288_s11 = smov 0  }
   0x6 LB: > { %3614 = sst [smem:[#allocation6_spill]] %s2258_s9  ;;  %s1772_s12 = sadd.s32 4294967295, %s2266_s11   ;;  %s2266_s11 = sphi %s2288_s11, %s13_s11   ;;  %s2262_s10 = sphi %s2286_s10, %s3912_s10   ;;  %s2258_s9 = sphi %s2284_s9, %s3911_s9  }
   0x7   : > { %3615 = sst [smem:[#allocation7_spill]] %s2262_s10  ;;  %s25_s13 = sadd.s32 1, %s2262_s10 }
   0x8   : > { %3616 = sst [smem:[#allocation8_spill]] %s2266_s11  ;;  %p27_p0 = scmp.ge.s32.totalorder %s25_s13, 2 }
   0x9   : > { %p1774_p1 = scmp.ge.s32.totalorder %s2266_s11, 1  ;;  %p100_p2 = scmp.lt.s32.totalorder %s2266_s11, 3 }
   0xa   : > { %s3914_s13 = smov (%p27_p0, %s25_s13), 0  ;;  %p2309_p4 = scmp.eq.s32.totalorder %s1772_s12, 0 }
   0xb   : > { %3617 = sst [smem:[#allocation9_spill]] %s3914_s13  ;;  %p2305_p3 = pnand %p1774_p1, %p100_p2 }
   0xc   : > { %s3620_s0 = sld [smem:[#allocation105_spill]] }
   0xd   : > { %p2184_p5 = pneg %p2305_p3 }
   0xf   : > { %p2185_p6 = pnand %p2309_p4, %p2184_p5 }
  0x11   : > { %p2227_p8 = pneg %p2185_p6 }
  0x12   : > { %s113_s18 = sshll.u32 %s3620_s0, 4  ;;  %s114_s18 = int_to_ptr.vmem [resolvable:$true] %s113_s18 }
  0x13   : > { %s2225_s19 = scalar_lea.vmem %s114_s18, 32  ;;  %p2233_p11 = scmp.lt.s32.totalorder %s114_s18, %s114_s18 }
  0x14   : > { %p2226_p7 = scmp.ne.s32.totalorder %s114_s18, %s2225_s19  ;;  %p2234_p12 = scmp.lt.s32.totalorder %s2225_s19, %s2225_s19 }
  0x16   : > { %p2228_p9 = pnand %p2227_p8, %p2226_p7  ;;  %p2235_p13 = por %p2234_p12, %p2233_p11 }
  0x18   : > { %p2229_p10 = pneg %p2228_p9 }
  0x1a   : > { %p2236_p0 = pnand %p2235_p13, %p2229_p10 }
  0x1c   : > { %2239 = shalt.err (!%p2236_p0)
}
  0x1d   : > { %s2268_s20 = smov [#allocation3]   ;;  %129 = sbr.rel (%p2305_p3) target bundleno = 508 (0x1fc), region = 28 }
  0x1e   : > { %2187 = dma.vmem_to_smem (!%p2185_p6), %s114_s18, 32, %s2268_s20, [#allocation4]  }
  0x24   : > { %2253 = dma.done.wait (%p2309_p4), [#allocation4], 32  }
  0x25   : > { %2255 = vsyncadd (%p2309_p4), [#allocation4], 4294967264 }
  0x26   : > { %135 = sfence }
  0x27   : > { %s3621_s1 = sld [smem:[#allocation106_spill]]  ;;  %s2479_s29 = sshll.u32 %s2258_s9, 7 }
  0x28   : > { %s162_s14 = sadd.s32 1, %s2479_s29  ;;  %s2526_s21 = sld [smem:[#allocation3 + %s2479_s29]] }
  0x29   : > { %s164_s22 = sadd.s32 2, %s2479_s29  ;;  %s166_s23 = sadd.s32 3, %s2479_s29 }
  0x2a   : > { %s2545_s26 = sld [smem:[#allocation3 + %s162_s14]]  ;;  %s168_s27 = sadd.s32 4, %s2479_s29 }
  0x2b   : > { %s170_s5 = sadd.s32 5, %s2479_s29  ;;  %s2571_s14 = sld [smem:[#allocation3 + %s164_s22]] }
  0x2c   : > { %s2573_s15 = sld [smem:[#allocation3 + %s166_s23]]  ;;  %s172_s19 = sadd.s32 6, %s2479_s29 }
  0x2d   : > { %v339_v0 = vld [vmem:[%s3621_s1 + $0x8] sm:$0xff]  ;;  %v341_v1 = vld [vmem:[%s3621_s1 + $0x18] sm:$0xff]  ;;  %v338_v2 = vld [vmem:[%s3621_s1] sm:$0xff]  ;;  %s2586_s18 = sld [smem:[#allocation3 + %s168_s27]]  ;;  %s174_s27 = sadd.s32 7, %s2479_s29 }
  0x2e   : > { %v402_v3 = vand.u32 4294901760, %v339_v0  ;;  %v406_v4 = vand.u32 4294901760, %v341_v1  ;;  %v340_v5 = vld [vmem:[%s3621_s1 + $0x10] sm:$0xff]  ;;  %v404_v6 = vand.u32 4294901760, %v338_v2  ;;  %v343_v7 = vld [vmem:[%s3621_s1 + $0x28] sm:$0xff]  ;;  %v345_v8 = vld [vmem:[%s3621_s1 + $0x38] sm:$0xff] }
  0x2f   : > { %v408_v9 = vand.u32 4294901760, %v340_v5  ;;  %v410_v10 = vand.u32 4294901760, %v343_v7  ;;  %v414_v11 = vand.u32 4294901760, %v345_v8  ;;  %v342_v12 = vld [vmem:[%s3621_s1 + $0x20] sm:$0xff]  ;;  %v344_v13 = vld [vmem:[%s3621_s1 + $0x30] sm:$0xff]  ;;  %v347_v14 = vld [vmem:[%s3621_s1 + $0x48] sm:$0xff] }
  0x30   : > { %v2353_v16 = vpack.c.bf16 %v406_v4, %v402_v3  ;;  %v2355_v17 = vsub.f32 %v339_v0, %v402_v3  ;;  %v2357_v18 = vsub.f32 %v341_v1, %v406_v4  ;;  %v2359_v19 = vsub.f32 %v338_v2, %v404_v6  ;;  %v349_v20 = vld [vmem:[%s3621_s1 + $0x58] sm:$0xff]  ;;  %v346_v21 = vld [vmem:[%s3621_s1 + $0x40] sm:$0xff]  ;;  %v348_v22 = vld [vmem:[%s3621_s1 + $0x50] sm:$0xff]  ;;  %s2601_s25 = sld [smem:[#allocation3 + %s170_s5]]  ;;  %s176_s6 = sadd.s32 8, %s2479_s29 }
  0x31   : > { %v2370_v23 = vpack.c.bf16 %v408_v9, %v404_v6  ;;  %v2372_v24 = vsub.f32 %v340_v5, %v408_v9  ;;  %v2374_v25 = vpack.c.bf16 %v414_v11, %v410_v10  ;;  %v2376_v26 = vsub.f32 %v343_v7, %v410_v10  ;;  %v351_v27 = vld [vmem:[%s3621_s1 + $0x68] sm:$0xff]  ;;  %v353_v28 = vld [vmem:[%s3621_s1 + $0x78] sm:$0xff]  ;;  %v350_v37 = vld [vmem:[%s3621_s1 + $0x60] sm:$0xff]  ;;  %s178_s7 = sadd.s32 9, %s2479_s29  ;;  %s2628_s17 = sld [smem:[#allocation3 + %s172_s19]] }
  0x32   : > { %3622 = vst [vmem:[#allocation10_spill] sm:$0xff] %v2353_v16  ;;  %3623 = vst [vmem:[#allocation11_spill] sm:$0xff] %v2355_v17  ;;  %1787 = vmatprep.subr.bf16.mxu1 %v2353_v16  ;;  %1979 = vmatprep.subr.bf16.mxu0 %v2353_v16  ;;  %v2386_v29 = vsub.f32 %v345_v8, %v414_v11  ;;  %v412_v30 = vand.u32 4294901760, %v342_v12  ;;  %v416_v31 = vand.u32 4294901760, %v344_v13  ;;  %v418_v32 = vand.u32 4294901760, %v347_v14  ;;  %v352_v42 = vld [vmem:[%s3621_s1 + $0x70] sm:$0xff] }
  0x33   : > { %3624 = vst [vmem:[#allocation12_spill] sm:$0xff] %v2357_v18  ;;  %3625 = vst [vmem:[#allocation13_spill] sm:$0xff] %v2359_v19  ;;  %1789 = vmatpush1.bf16.msra.mxu1 %v2370_v23  ;;  %1981 = vmatpush1.bf16.msra.mxu0 %v2370_v23  ;;  %v422_v33 = vand.u32 4294901760, %v349_v20  ;;  %v420_v34 = vand.u32 4294901760, %v346_v21  ;;  %v424_v35 = vand.u32 4294901760, %v348_v22  ;;  %v426_v36 = vand.u32 4294901760, %v351_v27 }
  0x34   : > { %3626 = vst [vmem:[#allocation14_spill] sm:$0xff] %v2370_v23  ;;  %3627 = vst [vmem:[#allocation15_spill] sm:$0xff] %v2372_v24  ;;  %1791 = vmatprep.subr.bf16.mxu1 %v2374_v25  ;;  %1983 = vmatprep.subr.bf16.mxu0 %v2374_v25  ;;  %v2395_v38 = vpack.c.bf16 %v416_v31, %v412_v30  ;;  %v2397_v39 = vsub.f32 %v342_v12, %v412_v30  ;;  %v430_v41 = vand.u32 4294901760, %v353_v28  ;;  %v355_v43 = vld [vmem:[%s3621_s1 + $0x88] sm:$0xff]  ;;  %v357_v44 = vld [vmem:[%s3621_s1 + $0x98] sm:$0xff]  ;;  %s182_s20 = sadd.s32 11, %s2479_s29 }
  0x35   : > { %3628 = vst [vmem:[#allocation16_spill] sm:$0xff] %v2374_v25  ;;  %3629 = vst [vmem:[#allocation17_spill] sm:$0xff] %v2376_v26  ;;  %v2399_v40 = vsub.f32 %v344_v13, %v416_v31  ;;  %v2410_v45 = vpack.c.bf16 %v422_v33, %v418_v32  ;;  %v2412_v46 = vsub.f32 %v347_v14, %v418_v32  ;;  %v354_v49 = vld [vmem:[%s3621_s1 + $0x80] sm:$0xff]  ;;  %v356_v50 = vld [vmem:[%s3621_s1 + $0x90] sm:$0xff]  ;;  %v428_v57 = vand.u32 4294901760, %v350_v37  ;;  %s2645_s19 = sld [smem:[#allocation3 + %s174_s27]] }
  0x36   : > { %3630 = vst [vmem:[#allocation18_spill] sm:$0xff] %v2386_v29  ;;  %3631 = vst [vmem:[#allocation19_spill] sm:$0xff] %v2395_v38  ;;  %v2414_v47 = vsub.f32 %v349_v20, %v422_v33  ;;  %v2416_v48 = vpack.c.bf16 %v424_v35, %v420_v34  ;;  %v359_v51 = vld [vmem:[%s3621_s1 + $0xa8] sm:$0xff]  ;;  %v2427_v52 = vsub.f32 %v346_v21, %v420_v34  ;;  %v432_v58 = vand.u32 4294901760, %v352_v42  ;;  %v361_v60 = vld [vmem:[%s3621_s1 + $0xb8] sm:$0xff]  ;;  %s186_s30 = sadd.s32 13, %s2479_s29 }
  0x37   : > { %3632 = vst [vmem:[#allocation20_spill] sm:$0xff] %v2397_v39  ;;  %3633 = vst [vmem:[#allocation21_spill] sm:$0xff] %v2399_v40  ;;  %v2429_v53 = vsub.f32 %v348_v22, %v424_v35  ;;  %v2431_v54 = vpack.c.bf16 %v430_v41, %v426_v36  ;;  %v2433_v55 = vsub.f32 %v351_v27, %v426_v36  ;;  %1793 = vmatpush1.bf16.msra.mxu1 %v2395_v38  ;;  %v358_v1 = vld [vmem:[%s3621_s1 + $0xa0] sm:$0xff]  ;;  %v360_v2 = vld [vmem:[%s3621_s1 + $0xb0] sm:$0xff]  ;;  %s2655_s5 = sld [smem:[#allocation3 + %s176_s6]]  ;;  %s190_s6 = sadd.s32 15, %s2479_s29 }
  0x38   : > { %3634 = vst [vmem:[#allocation22_spill] sm:$0xff] %v2410_v45  ;;  %3635 = vst [vmem:[#allocation23_spill] sm:$0xff] %v2412_v46  ;;  %1985 = vmatpush1.bf16.msra.mxu0 %v2395_v38  ;;  %v2437_v56 = vsub.f32 %v353_v28, %v430_v41  ;;  %v434_v59 = vand.u32 4294901760, %v355_v43  ;;  %1795 = vmatprep.subr.bf16.mxu1 %v2410_v45  ;;  %v438_v61 = vand.u32 4294901760, %v357_v44  ;;  %v436_v62 = vand.u32 4294901760, %v354_v49  ;;  %v363_v7 = vld [vmem:[%s3621_s1 + $0xc8] sm:$0xff] }
  0x39   : > { %3636 = vst [vmem:[#allocation24_spill] sm:$0xff] %v2414_v47  ;;  %3637 = vst [vmem:[#allocation25_spill] sm:$0xff] %v2416_v48  ;;  %1987 = vmatprep.subr.bf16.mxu0 %v2410_v45  ;;  %v440_v63 = vand.u32 4294901760, %v356_v50  ;;  %v442_v0 = vand.u32 4294901760, %v359_v51  ;;  %v2450_v3 = vpack.c.bf16 %v432_v58, %v428_v57  ;;  %v2452_v4 = vsub.f32 %v350_v37, %v428_v57  ;;  %v365_v8 = vld [vmem:[%s3621_s1 + $0xd8] sm:$0xff]  ;;  %v362_v9 = vld [vmem:[%s3621_s1 + $0xc0] sm:$0xff] }
  0x3a   : > { %3638 = vst [vmem:[#allocation26_spill] sm:$0xff] %v2427_v52  ;;  %3639 = vst [vmem:[#allocation27_spill] sm:$0xff] %v2429_v53  ;;  %v2454_v5 = vsub.f32 %v352_v42, %v432_v58  ;;  %v2456_v6 = vsub.f32 %v355_v43, %v434_v59  ;;  %v2467_v10 = vpack.c.bf16 %v438_v61, %v434_v59  ;;  %v364_v14 = vld [vmem:[%s3621_s1 + $0xd0] sm:$0xff]  ;;  %v446_v21 = vand.u32 4294901760, %v361_v60  ;;  %v367_v33 = vld [vmem:[%s3621_s1 + $0xe8] sm:$0xff]  ;;  %s2657_s8 = sld [smem:[#allocation3 + %s178_s7]] }
  0x3b   : > { %3640 = vst [vmem:[#allocation28_spill] sm:$0xff] %v2431_v54  ;;  %3641 = vst [vmem:[#allocation29_spill] sm:$0xff] %v2433_v55  ;;  %v2469_v11 = vsub.f32 %v357_v44, %v438_v61  ;;  %v2471_v12 = vpack.c.bf16 %v440_v63, %v436_v62  ;;  %v2473_v13 = vsub.f32 %v354_v49, %v436_v62  ;;  %1797 = vmatpush1.bf16.msra.mxu1 %v2416_v48  ;;  %v369_v41 = vld [vmem:[%s3621_s1 + $0xf8] sm:$0xff]  ;;  %v366_v42 = vld [vmem:[%s3621_s1 + $0xe0] sm:$0xff]  ;;  %s2669_s23 = sld [smem:[#allocation3 + %s182_s20]]  ;;  %s202_s4 = sadd.s32 21, %s2479_s29 }
  0x3c   : > { %3642 = vst [vmem:[#allocation30_spill] sm:$0xff] %v2437_v56  ;;  %3643 = vst [vmem:[#allocation31_spill] sm:$0xff] %v2450_v3  ;;  %1989 = vmatpush1.bf16.msra.mxu0 %v2416_v48  ;;  %v2483_v20 = vsub.f32 %v356_v50, %v440_v63  ;;  %v2485_v22 = vsub.f32 %v359_v51, %v442_v0  ;;  %v444_v27 = vand.u32 4294901760, %v358_v1  ;;  %1799 = vmatprep.subr.bf16.mxu1 %v2431_v54  ;;  %v368_v43 = vld [vmem:[%s3621_s1 + $0xf0] sm:$0xff]  ;;  %v371_v57 = vld [vmem:[%s3621_s1 + $0x108] sm:$0xff]  ;;  %s2686_s20 = sld [smem:[#allocation3 + %s186_s30]] }
  0x3d   : > { %3644 = vst [vmem:[#allocation32_spill] sm:$0xff] %v2467_v10  ;;  %3645 = vst [vmem:[#allocation33_spill] sm:$0xff] %v2471_v12  ;;  %1991 = vmatprep.subr.bf16.mxu0 %v2431_v54  ;;  %v448_v28 = vand.u32 4294901760, %v360_v2  ;;  %v450_v30 = vand.u32 4294901760, %v363_v7  ;;  %v454_v31 = vand.u32 4294901760, %v365_v8  ;;  %v452_v32 = vand.u32 4294901760, %v362_v9 }
  0x3e   : > { %3646 = vst [vmem:[#allocation34_spill] sm:$0xff] %v2473_v13  ;;  %3647 = vst [vmem:[#allocation35_spill] sm:$0xff] %v2483_v20  ;;  %v2492_v34 = vpack.c.bf16 %v446_v21, %v442_v0  ;;  %v2494_v35 = vsub.f32 %v361_v60, %v446_v21  ;;  %v2496_v36 = vsub.f32 %v358_v1, %v444_v27  ;;  %v456_v37 = vand.u32 4294901760, %v364_v14  ;;  %v373_v58 = vld [vmem:[%s3621_s1 + $0x118] sm:$0xff]  ;;  %v370_v59 = vld [vmem:[%s3621_s1 + $0x100] sm:$0xff]  ;;  %s206_s30 = sadd.s32 23, %s2479_s29 }
  0x3f   : > { %3648 = vst [vmem:[#allocation36_spill] sm:$0xff] %v2485_v22  ;;  %v2508_v44 = vpack.c.bf16 %v448_v28, %v444_v27  ;;  %v2510_v49 = vsub.f32 %v360_v2, %v448_v28  ;;  %v2512_v50 = vpack.c.bf16 %v454_v31, %v450_v30  ;;  %v2514_v51 = vsub.f32 %v363_v7, %v450_v30  ;;  %v377_v30 = vld [vmem:[%s3621_s1 + $0x138] sm:$0xff]  ;;  %v374_v15 = vld [vmem:[%s3621_s1 + $0x120] sm:$0xff]  ;;  %v380_v54 = vld [vmem:[%s3621_s1 + $0x150] sm:$0xff]  ;;  %s2704_s22 = sld [smem:[#allocation3 + %s190_s6]]  ;;  %s210_s7 = sadd.s32 25, %s2479_s29 }
  0x40   : > { %3649 = vst [vmem:[#allocation37_spill] sm:$0xff] %v2492_v34  ;;  %3650 = vst [vmem:[#allocation38_spill] sm:$0xff] %v2494_v35  ;;  %1801 = vmatpush1.bf16.msra.mxu1 %v2450_v3  ;;  %1993 = vmatpush1.bf16.msra.mxu0 %v2450_v3  ;;  %v2530_v60 = vsub.f32 %v365_v8, %v454_v31  ;;  %v2532_v61 = vpack.c.bf16 %v456_v37, %v452_v32  ;;  %v458_v63 = vand.u32 4294901760, %v367_v33  ;;  %v372_v8 = vld [vmem:[%s3621_s1 + $0x110] sm:$0xff]  ;;  %v378_v3 = vld [vmem:[%s3621_s1 + $0x140] sm:$0xff]  ;;  %s198_s12 = sadd.s32 19, %s2479_s29 }
  0x41   : > { %3651 = vst [vmem:[#allocation39_spill] sm:$0xff] %v2508_v44  ;;  %3652 = vst [vmem:[#allocation40_spill] sm:$0xff] %v2512_v50  ;;  %v2534_v62 = vsub.f32 %v362_v9, %v452_v32  ;;  %1803 = vmatprep.subr.bf16.mxu1 %v2467_v10  ;;  %1995 = vmatprep.subr.bf16.mxu0 %v2467_v10  ;;  %v2540_v0 = vsub.f32 %v364_v14, %v456_v37  ;;  %v462_v1 = vand.u32 4294901760, %v369_v41  ;;  %v375_v14 = vld [vmem:[%s3621_s1 + $0x128] sm:$0xff]  ;;  %v376_v10 = vld [vmem:[%s3621_s1 + $0x130] sm:$0xff]  ;;  %s2718_s16 = sld [smem:[#allocation3 + %s202_s4]] }
  0x42   : > { %3653 = vst [vmem:[#allocation41_spill] sm:$0xff] %v2514_v51  ;;  %3654 = vst [vmem:[#allocation42_spill] sm:$0xff] %v2532_v61  ;;  %v460_v2 = vand.u32 4294901760, %v366_v42  ;;  %v464_v7 = vand.u32 4294901760, %v368_v43  ;;  %v2548_v9 = vsub.f32 %v367_v33, %v458_v63  ;;  %v466_v21 = vand.u32 4294901760, %v371_v57  ;;  %v383_v48 = vld [vmem:[%s3621_s1 + $0x168] sm:$0xff] }
  0x43   : > { %3655 = vst [vmem:[#allocation43_spill] sm:$0xff] %v2534_v62  ;;  %3656 = vst [vmem:[#allocation44_spill] sm:$0xff] %v2540_v0  ;;  %v470_v27 = vand.u32 4294901760, %v373_v58  ;;  %v468_v28 = vand.u32 4294901760, %v370_v59  ;;  %v2557_v31 = vpack.c.bf16 %v462_v1, %v458_v63  ;;  %v2559_v32 = vsub.f32 %v369_v41, %v462_v1  ;;  %v382_v25 = vld [vmem:[%s3621_s1 + $0x160] sm:$0xff]  ;;  %v384_v23 = vld [vmem:[%s3621_s1 + $0x170] sm:$0xff] }
  0x44   : > { %3657 = vst [vmem:[#allocation45_spill] sm:$0xff] %v2548_v9  ;;  %v2561_v37 = vpack.c.bf16 %v464_v7, %v460_v2  ;;  %v2563_v33 = vsub.f32 %v366_v42, %v460_v2  ;;  %1805 = vmatpush1.bf16.msra.mxu1 %v2471_v12  ;;  %1997 = vmatpush1.bf16.msra.mxu0 %v2471_v12  ;;  %v472_v1 = vand.u32 4294901760, %v372_v8  ;;  %v379_v2 = vld [vmem:[%s3621_s1 + $0x148] sm:$0xff]  ;;  %v381_v12 = vld [vmem:[%s3621_s1 + $0x158] sm:$0xff]  ;;  %s2737_s27 = sld [smem:[#allocation3 + %s206_s30]]  ;;  %s180_s13 = sadd.s32 10, %s2479_s29 }
  0x45   : > { %3658 = vst [vmem:[#allocation46_spill] sm:$0xff] %v2557_v31  ;;  %3659 = vst [vmem:[#allocation47_spill] sm:$0xff] %v2559_v32  ;;  %v2577_v41 = vsub.f32 %v368_v43, %v464_v7  ;;  %v2579_v42 = vpack.c.bf16 %v470_v27, %v466_v21  ;;  %v2581_v63 = vsub.f32 %v371_v57, %v466_v21  ;;  %1807 = vmatprep.subr.bf16.mxu1 %v2492_v34  ;;  %v387_v16 = vld [vmem:[%s3621_s1 + $0x188] sm:$0xff]  ;;  %s3694_s24 = sadd.s32 17, %s2479_s29  ;;  %s2755_s28 = sld [smem:[#allocation3 + %s210_s7]] }
  0x46   : > { %3660 = vst [vmem:[#allocation48_spill] sm:$0xff] %v2561_v37  ;;  %3661 = vst [vmem:[#allocation49_spill] sm:$0xff] %v2563_v33  ;;  %1999 = vmatprep.subr.bf16.mxu0 %v2492_v34  ;;  %v2591_v43 = vsub.f32 %v373_v58, %v470_v27  ;;  %v2593_v7 = vsub.f32 %v370_v59, %v468_v28  ;;  %v474_v57 = vand.u32 4294901760, %v375_v14  ;;  %v478_v21 = vand.u32 4294901760, %v377_v30  ;;  %s2753_s30 = sld [smem:[#allocation3 + %s3694_s24]]  ;;  %s204_s3 = sadd.s32 22, %s2479_s29 }
  0x47   : > { %3662 = vst [vmem:[#allocation50_spill] sm:$0xff] %v2577_v41  ;;  %3663 = vst [vmem:[#allocation51_spill] sm:$0xff] %v2579_v42  ;;  %v2604_v34 = vpack.c.bf16 %v472_v1, %v468_v28  ;;  %v2606_v58 = vsub.f32 %v372_v8, %v472_v1  ;;  %v476_v59 = vand.u32 4294901760, %v374_v15  ;;  %v480_v27 = vand.u32 4294901760, %v376_v10  ;;  %v385_v1 = vld [vmem:[%s3621_s1 + $0x178] sm:$0xff]  ;;  %s2766_s0 = sld [smem:[#allocation3 + %s198_s12]] }
  0x48   : > { %3664 = vst [vmem:[#allocation52_spill] sm:$0xff] %v2581_v63  ;;  %3665 = vst [vmem:[#allocation53_spill] sm:$0xff] %v2591_v43  ;;  %v2616_v45 = vpack.c.bf16 %v478_v21, %v474_v57  ;;  %v2618_v38 = vsub.f32 %v375_v14, %v474_v57  ;;  %v2620_v28 = vsub.f32 %v377_v30, %v478_v21  ;;  %v482_v8 = vand.u32 4294901760, %v379_v2  ;;  %v396_v43 = vld [vmem:[%s3621_s1 + $0x1d0] sm:$0xff]  ;;  %s2774_s10 = sld [smem:[#allocation3 + %s180_s13]]  ;;  %s200_s7 = sadd.s32 20, %s2479_s29 }
  0x49   : > { %3666 = vst [vmem:[#allocation54_spill] sm:$0xff] %v2593_v7  ;;  %3667 = vst [vmem:[#allocation55_spill] sm:$0xff] %v2604_v34  ;;  %1809 = vmatpush1.bf16.msra.mxu1 %v2508_v44  ;;  %2001 = vmatpush1.bf16.msra.mxu0 %v2508_v44  ;;  %v2633_v14 = vpack.c.bf16 %v480_v27, %v476_v59  ;;  %v2635_v30 = vsub.f32 %v374_v15, %v476_v59  ;;  %v486_v21 = vand.u32 4294901760, %v381_v12  ;;  %v389_v44 = vld [vmem:[%s3621_s1 + $0x198] sm:$0xff]  ;;  %v394_v7 = vld [vmem:[%s3621_s1 + $0x1c0] sm:$0xff]  ;;  %s208_s6 = sadd.s32 24, %s2479_s29 }
  0x4a   : > { %3668 = vst [vmem:[#allocation56_spill] sm:$0xff] %v2606_v58  ;;  %3669 = vst [vmem:[#allocation57_spill] sm:$0xff] %v2616_v45  ;;  %v2637_v57 = vsub.f32 %v376_v10, %v480_v27  ;;  %1811 = vmatprep.subr.bf16.mxu1 %v2512_v50  ;;  %2003 = vmatprep.subr.bf16.mxu0 %v2512_v50  ;;  %v2650_v15 = vsub.f32 %v379_v2, %v482_v8  ;;  %v484_v10 = vand.u32 4294901760, %v378_v3  ;;  %v386_v2 = vld [vmem:[%s3621_s1 + $0x180] sm:$0xff]  ;;  %v393_v58 = vld [vmem:[%s3621_s1 + $0x1b8] sm:$0xff]  ;;  %s188_s13 = sadd.s32 14, %s2479_s29 }
  0x4b   : > { %3670 = vst [vmem:[#allocation58_spill] sm:$0xff] %v2618_v38  ;;  %3671 = vst [vmem:[#allocation59_spill] sm:$0xff] %v2620_v28  ;;  %v488_v59 = vand.u32 4294901760, %v380_v54  ;;  %v490_v27 = vand.u32 4294901760, %v383_v48  ;;  %v494_v28 = vand.u32 4294901760, %v385_v1  ;;  %v492_v50 = vand.u32 4294901760, %v382_v25 }
  0x4c   : > { %3672 = vst [vmem:[#allocation60_spill] sm:$0xff] %v2633_v14  ;;  %3673 = vst [vmem:[#allocation61_spill] sm:$0xff] %v2635_v30  ;;  %v2661_v30 = vsub.f32 %v381_v12, %v486_v21  ;;  %s192_s24 = sadd.s32 16, %s2479_s29  ;;  %s196_s12 = sadd.s32 18, %s2479_s29 }
  0x4d   : > { %3674 = vst [vmem:[#allocation62_spill] sm:$0xff] %v2637_v57  ;;  %3675 = vst [vmem:[#allocation63_spill] sm:$0xff] %v2650_v15  ;;  %v2659_v57 = vpack.c.bf16 %v486_v21, %v482_v8  ;;  %v388_v15 = vld [vmem:[%s3621_s1 + $0x190] sm:$0xff]  ;;  %v2672_v38 = vpack.c.bf16 %v488_v59, %v484_v10  ;;  %v2674_v8 = vsub.f32 %v378_v3, %v484_v10  ;;  %1813 = vmatpush1.bf16.msra.mxu1 %v2532_v61  ;;  %s2807_s4 = sld [smem:[#allocation3 + %s204_s3]]  ;;  %s3711_s3 = sadd.s32 12, %s2479_s29 }
  0x4e   : > { %3677 = vst [vmem:[#allocation65_spill] sm:$0xff] %v2661_v30  ;;  %v2676_v12 = vsub.f32 %v380_v54, %v488_v59  ;;  %v2678_v21 = vsub.f32 %v383_v48, %v490_v27  ;;  %v391_v30 = vld [vmem:[%s3621_s1 + $0x1a8] sm:$0xff]  ;;  %2005 = vmatpush1.bf16.msra.mxu0 %v2532_v61  ;;  %v2691_v54 = vpack.c.bf16 %v494_v28, %v490_v27  ;;  %v496_v3 = vand.u32 4294901760, %v384_v23  ;;  %v390_v59 = vld [vmem:[%s3621_s1 + $0x1a0] sm:$0xff]  ;;  %s2816_s11 = sld [smem:[#allocation3 + %s208_s6]] }
  0x4f   : > { %3676 = vst [vmem:[#allocation64_spill] sm:$0xff] %v2659_v57  ;;  %3678 = vst [vmem:[#allocation66_spill] sm:$0xff] %v2672_v38  ;;  %v2693_v48 = vsub.f32 %v385_v1, %v494_v28  ;;  %v2695_v10 = vsub.f32 %v382_v25, %v492_v50  ;;  %1815 = vmatprep.subr.bf16.mxu1 %v2557_v31  ;;  %2007 = vmatprep.subr.bf16.mxu0 %v2557_v31  ;;  %v502_v61 = vand.u32 4294901760, %v389_v44  ;;  %v395_v31 = vld [vmem:[%s3621_s1 + $0x1c8] sm:$0xff]  ;;  %s2825_s2 = sld [smem:[#allocation3 + %s3711_s3]] }
  0x50   : > { %3679 = vst [vmem:[#allocation67_spill] sm:$0xff] %v2674_v8  ;;  %3680 = vst [vmem:[#allocation68_spill] sm:$0xff] %v2676_v12  ;;  %v500_v27 = vand.u32 4294901760, %v386_v2  ;;  %v504_v12 = vand.u32 4294901760, %v388_v15  ;;  %v2707_v25 = vpack.c.bf16 %v496_v3, %v492_v50  ;;  %v2709_v28 = vsub.f32 %v384_v23, %v496_v3  ;;  %s2827_s9 = sld [smem:[#allocation3 + %s188_s13]] }
  0x51   : > { %3681 = vst [vmem:[#allocation69_spill] sm:$0xff] %v2678_v21  ;;  %3682 = vst [vmem:[#allocation70_spill] sm:$0xff] %v2691_v54  ;;  %v498_v21 = vand.u32 4294901760, %v387_v16  ;;  %v506_v1 = vand.u32 4294901760, %v391_v30  ;;  %v2724_v23 = vsub.f32 %v389_v44, %v502_v61  ;;  %1817 = vmatpush1.bf16.msra.mxu1 %v2561_v37  ;;  %s2836_s29 = sld [smem:[#allocation3 + %s192_s24]] }
  0x52   : > { %3683 = vst [vmem:[#allocation71_spill] sm:$0xff] %v2693_v48  ;;  %3684 = vst [vmem:[#allocation72_spill] sm:$0xff] %v2695_v10  ;;  %v510_v10 = vand.u32 4294901760, %v393_v58  ;;  %v392_v48 = vld [vmem:[%s3621_s1 + $0x1b0] sm:$0xff]  ;;  %v2726_v3 = vpack.c.bf16 %v504_v12, %v500_v27  ;;  %2009 = vmatpush1.bf16.msra.mxu0 %v2561_v37  ;;  %v2744_v44 = vsub.f32 %v388_v15, %v504_v12  ;;  %1819 = vmatprep.subr.bf16.mxu1 %v2579_v42  ;;  %v401_v37 = vld [vmem:[%s3621_s1 + $0x1f8] sm:$0xff] }
  0x53   : > { %3685 = vst [vmem:[#allocation73_spill] sm:$0xff] %v2707_v25  ;;  %3686 = vst [vmem:[#allocation74_spill] sm:$0xff] %v2709_v28  ;;  %v2720_v8 = vpack.c.bf16 %v502_v61, %v498_v21  ;;  %v2722_v50 = vsub.f32 %v387_v16, %v498_v21  ;;  %v397_v28 = vld [vmem:[%s3621_s1 + $0x1d8] sm:$0xff]  ;;  %v2742_v16 = vsub.f32 %v386_v2, %v500_v27  ;;  %v508_v21 = vand.u32 4294901760, %v390_v59 }
  0x54   : > { %3689 = vst [vmem:[#allocation77_spill] sm:$0xff] %v2724_v23  ;;  %3690 = vst [vmem:[#allocation78_spill] sm:$0xff] %v2726_v3  ;;  %v2746_v61 = vpack.c.bf16 %v510_v10, %v506_v1  ;;  %v399_v23 = vld [vmem:[%s3621_s1 + $0x1e8] sm:$0xff]  ;;  %2011 = vmatprep.subr.bf16.mxu0 %v2579_v42  ;;  %v2759_v2 = vsub.f32 %v391_v30, %v506_v1  ;;  %v2761_v15 = vsub.f32 %v393_v58, %v510_v10  ;;  %v398_v58 = vld [vmem:[%s3621_s1 + $0x1e0] sm:$0xff] }
  0x55   : > { %3687 = vst [vmem:[#allocation75_spill] sm:$0xff] %v2720_v8  ;;  %3688 = vst [vmem:[#allocation76_spill] sm:$0xff] %v2722_v50  ;;  %v512_v12 = vand.u32 4294901760, %v392_v48  ;;  %v514_v27 = vand.u32 4294901760, %v395_v31  ;;  %v516_v50 = vand.u32 4294901760, %v394_v7  ;;  %v520_v42 = vand.u32 4294901760, %v396_v43  ;;  %1821 = vmatpush1.bf16.msra.mxu1 %v2604_v34 }
  0x56   : > { %3691 = vst [vmem:[#allocation79_spill] sm:$0xff] %v2742_v16  ;;  %3692 = vst [vmem:[#allocation80_spill] sm:$0xff] %v2744_v44  ;;  %v2769_v44 = vsub.f32 %v390_v59, %v508_v21  ;;  %v518_v16 = vand.u32 4294901760, %v397_v28  ;;  %v522_v59 = vand.u32 4294901760, %v399_v23  ;;  %2013 = vmatpush1.bf16.msra.mxu0 %v2604_v34  ;;  %1823 = vmatprep.subr.bf16.mxu1 %v2616_v45 }
  0x57   : > { %3693 = vst [vmem:[#allocation81_spill] sm:$0xff] %v2746_v61  ;;  %3695 = vst [vmem:[#allocation82_spill] sm:$0xff] %v2759_v2  ;;  %v2777_v30 = vpack.c.bf16 %v512_v12, %v508_v21  ;;  %v2779_v10 = vsub.f32 %v392_v48, %v512_v12  ;;  %v2781_v1 = vsub.f32 %v395_v31, %v514_v27  ;;  %v526_v31 = vand.u32 4294901760, %v401_v37 }
  0x58   : > { %3696 = vst [vmem:[#allocation83_spill] sm:$0xff] %v2761_v15  ;;  %3697 = vst [vmem:[#allocation84_spill] sm:$0xff] %v2769_v44  ;;  %v400_v44 = vld [vmem:[%s3621_s1 + $0x1f0] sm:$0xff]  ;;  %v2790_v15 = vpack.c.bf16 %v518_v16, %v514_v27  ;;  %v2792_v21 = vsub.f32 %v397_v28, %v518_v16  ;;  %v2794_v48 = vpack.c.bf16 %v520_v42, %v516_v50  ;;  %2015 = vmatprep.subr.bf16.mxu0 %v2616_v45  ;;  %s2814_s1 = sld [smem:[#allocation3 + %s200_s7]] }
  0x59   : > { %3698 = vst [vmem:[#allocation85_spill] sm:$0xff] %v2777_v30  ;;  %3699 = vst [vmem:[#allocation86_spill] sm:$0xff] %v2779_v10  ;;  %v2800_v12 = vsub.f32 %v394_v7, %v516_v50  ;;  %v2804_v27 = vsub.f32 %v399_v23, %v522_v59  ;;  %v524_v28 = vand.u32 4294901760, %v398_v58  ;;  %v2809_v16 = vpack.c.bf16 %v526_v31, %v522_v59  ;;  %s2838_s7 = sld [smem:[#allocation3 + %s196_s12]] }
  0x5a   : > { %3700 = vst [vmem:[#allocation87_spill] sm:$0xff] %v2781_v1  ;;  %3701 = vst [vmem:[#allocation88_spill] sm:$0xff] %v2790_v15  ;;  %v2802_v1 = vsub.f32 %v396_v43, %v520_v42  ;;  %v2811_v34 = vsub.f32 %v401_v37, %v526_v31  ;;  %v3709_v10 = vlaneseq  ;;  %1825 = vmatpush1.bf16.msra.mxu1 %v2633_v14  ;;  %2017 = vmatpush1.bf16.msra.mxu0 %v2633_v14  ;;  %v549_v50 = vand.u32 4294901760, %v2355_v17 }
  0x5b   : > { %3702 = vst [vmem:[#allocation89_spill] sm:$0xff] %v2792_v21  ;;  %3703 = vst [vmem:[#allocation90_spill] sm:$0xff] %v2794_v48  ;;  %v528_v21 = vand.u32 4294901760, %v400_v44  ;;  %v2818_v42 = vsub.f32 %v398_v58, %v524_v28  ;;  %1827 = vmatprep.subr.bf16.mxu1 %v2659_v57  ;;  %2019 = vmatprep.subr.bf16.mxu0 %v2659_v57  ;;  %v555_v7 = vand.u32 4294901760, %v2359_v19  ;;  %v585_v57 = vand.u32 4294901760, %v2386_v29 }
  0x5c   : > { %3704 = vst [vmem:[#allocation91_spill] sm:$0xff] %v2800_v12  ;;  %3705 = vst [vmem:[#allocation92_spill] sm:$0xff] %v2802_v1  ;;  %v213_v45 = vshrl.u32 %v3709_v10, 7  ;;  %v215_v43 = vand.u32 127, %v3709_v10  ;;  %v3729_v12 = vstv %s2807_s4 }
  0x5d   : > { %3706 = vst [vmem:[#allocation93_spill] sm:$0xff] %v2804_v27  ;;  %3707 = vst [vmem:[#allocation94_spill] sm:$0xff] %v2809_v16  ;;  %v2831_v37 = vpack.c.bf16 %v528_v21, %v524_v28  ;;  %v2833_v23 = vsub.f32 %v400_v44, %v528_v21 }
  0x5e   : > { %3708 = vst [vmem:[#allocation95_spill] sm:$0xff] %v2811_v34  ;;  %3710 = vst [vmem:[#allocation96_spill] sm:$0xff] %v2818_v42  ;;  %v216_v58 = vmul.u32 128, %v213_v45  ;;  %1829 = vmatpush1.bf16.msra.mxu1 %v2672_v38  ;;  %2021 = vmatpush1.bf16.msra.mxu0 %v2672_v38  ;;  %v573_v45 = vand.u32 4294901760, %v2376_v26  ;;  %v556_v38 = vsub.f32 %v2359_v19, %v555_v7 }
  0x5f   : > { %3712 = vst [vmem:[#allocation97_spill] sm:$0xff] %v2831_v37  ;;  %3713 = vst [vmem:[#allocation98_spill] sm:$0xff] %v2833_v23  ;;  %1831 = vmatprep.subr.bf16.mxu1 %v2691_v54  ;;  %2023 = vmatprep.subr.bf16.mxu0 %v2691_v54  ;;  %v561_v23 = vand.u32 4294901760, %v2357_v18 }
  0x60   : > { %v217_v28 = vadd.s32 %v216_v58, %v215_v43  ;;  %v550_v43 = vsub.f32 %v2355_v17, %v549_v50 }
  0x61   : > { %v562_v58 = vsub.f32 %v2357_v18, %v561_v23  ;;  %v2869_v10 = vpack.c.bf16 %v561_v23, %v549_v50  ;;  %v567_v50 = vand.u32 4294901760, %v2372_v24 }
  0x62   : > { %v218_v59 = vcvt.s32.f32 %v217_v28  ;;  %v236_v28 = vstv %s2816_s11  ;;  %1833 = vmatpush1.bf16.msra.mxu1 %v2707_v25  ;;  %2025 = vmatpush1.bf16.msra.mxu0 %v2707_v25  ;;  %v551_v44 = vand.u32 4294901760, %v550_v43  ;;  %v586_v25 = vsub.f32 %v2386_v29, %v585_v57  ;;  %s3909_s11 = sld [smem:[#allocation107_spill]] }
  0x63   : > { %1835 = vmatprep.subr.bf16.mxu1 %v2720_v8  ;;  %2027 = vmatprep.subr.bf16.mxu0 %v2720_v8  ;;  %v563_v42 = vand.u32 4294901760, %v562_v58  ;;  %v568_v54 = vsub.f32 %v2372_v24, %v567_v50  ;;  %v2888_v8 = vpack.c.bf16 %v567_v50, %v555_v7  ;;  %v574_v58 = vsub.f32 %v2376_v26, %v573_v45 }
  0x64   : > { %v223_v21 = vadd.f32 0.5, %v218_v59  ;;  %v2896_v7 = vpack.c.bf16 %v585_v57, %v573_v45  ;;  %v587_v26 = vand.u32 4294901760, %v586_v25  ;;  %v3718_v25 = vstv %s2601_s25 }
  0x65   : > { %v2884_v31 = vpack.c.bf16 %v563_v42, %v551_v44  ;;  %v557_v42 = vand.u32 4294901760, %v556_v38  ;;  %v569_v44 = vand.u32 4294901760, %v568_v54  ;;  %v575_v29 = vand.u32 4294901760, %v574_v58 }
  0x66   : > { %v224_v14 = vmul.f32 0.0625, %v223_v21  ;;  %v3552_v21 = vand.u32 4294901760, %v2397_v39  ;;  %1837 = vmatpush1.bf16.msra.mxu1 %v2726_v3  ;;  %2029 = vmatpush1.bf16.msra.mxu0 %v2726_v3  ;;  %v591_v54 = vand.u32 4294901760, %v2399_v40  ;;  %v3717_v58 = vstv %s2573_s15 }
  0x67   : > { %1839 = vmatprep.subr.bf16.mxu1 %v2746_v61  ;;  %2031 = vmatprep.subr.bf16.mxu0 %v2746_v61  ;;  %v2903_v61 = vpack.c.bf16 %v569_v44, %v557_v42  ;;  %v3719_v44 = vstv %s2645_s19  ;;  %v3720_v57 = vstv %s2657_s8  ;;  %v2925_v34 = vpack.c.bf16 %v587_v26, %v575_v29 }
  0x68   : > { %v225_v23 = vfloor.f32 %v224_v14  ;;  %v2901_v50 = vsub.f32 %v2397_v39, %v3552_v21  ;;  %v3726_v29 = vstv %s2628_s17 }
  0x69   : > { %3714 = vst [vmem:[#allocation99_spill] sm:$0xff] %v2903_v61  ;;  %3721 = vst [vmem:[#allocation100_spill] sm:$0xff] %v2925_v34 }
  0x6a   : > { %v226_v43 = vmul.f32 16.0, %v225_v23  ;;  %v230_v14 = vmul.f32 0.13333334, %v225_v23  ;;  %v581_v38 = vand.u32 4294901760, %v2901_v50  ;;  %1841 = vmatpush1.bf16.msra.mxu1 %v2777_v30  ;;  %2033 = vmatpush1.bf16.msra.mxu0 %v2777_v30 }
  0x6b   : > { %1843 = vmatprep.subr.bf16.mxu1 %v2790_v15  ;;  %2035 = vmatprep.subr.bf16.mxu0 %v2790_v15 }
  0x6c   : > { %v227_v23 = vsub.f32 %v218_v59, %v226_v43  ;;  %v1782_v3 = vadd.f32 -1.0, %v230_v14  ;;  %v3715_v59 = vstv %s2755_s28  ;;  %v3716_v14 = vstv %s2545_s26 }
  0x6e   : > { %v228_v45 = vmul.f32 0.13333334, %v227_v23  ;;  %v244_v43 = vmul.f32 %v1782_v3, %v3715_v59  ;;  %v249_v21 = vsub.f32 %v1782_v3, %v3716_v14  ;;  %v266_v24 = vsub.f32 %v1782_v3, %v3717_v58  ;;  %1845 = vmatpush1.bf16.msra.mxu1 %v2794_v48  ;;  %2037 = vmatpush1.bf16.msra.mxu0 %v2794_v48 }
  0x6f   : > { %v283_v42 = vsub.f32 %v1782_v3, %v3718_v25  ;;  %v300_v50 = vsub.f32 %v1782_v3, %v3719_v44  ;;  %v317_v30 = vsub.f32 %v1782_v3, %v3720_v57  ;;  %v609_v23 = vand.u32 4294901760, %v2414_v47  ;;  %1847 = vmatprep.subr.bf16.mxu1 %v2809_v16  ;;  %2039 = vmatprep.subr.bf16.mxu0 %v2809_v16 }
  0x70   : > { %v1781_v59 = vadd.f32 -1.0, %v228_v45  ;;  %v251_v14 = vmul.f32 %v249_v21, %v249_v21  ;;  %v268_v58 = vmul.f32 %v266_v24, %v266_v24  ;;  %v237_v19 = vmul.f32 %v1782_v3, %v236_v28 }
  0x71   : > { %v285_v18 = vmul.f32 %v283_v42, %v283_v42  ;;  %v302_v15 = vmul.f32 %v300_v50, %v300_v50  ;;  %v319_v17 = vmul.f32 %v317_v30, %v317_v30  ;;  %v3722_v57 = vstv %s2737_s27 }
  0x72   : > { %v240_v25 = vmul.f32 %v1781_v59, %v3722_v57  ;;  %v3723_v45 = vstv %s2526_s21  ;;  %v3724_v21 = vstv %s2571_s14  ;;  %v603_v24 = vand.u32 4294901760, %v2427_v52  ;;  %1849 = vmatpush1.bf16.msra.mxu1 %v2831_v37  ;;  %2041 = vmatpush1.bf16.msra.mxu0 %v2831_v37 }
  0x73   : > { %v247_v44 = vsub.f32 %v1781_v59, %v3723_v45  ;;  %v264_v27 = vsub.f32 %v1781_v59, %v3724_v21  ;;  %v3725_v3 = vstv %s2586_s18  ;;  %v298_v30 = vsub.f32 %v1781_v59, %v3726_v29  ;;  %1851 = vmatprep.subr.bf16.mxu1 %v2884_v31  ;;  %2043 = vmatprep.subr.bf16.mxu0 %v2869_v10 }
  0x74   : > { %v281_v26 = vsub.f32 %v1781_v59, %v3725_v3  ;;  %v3727_v28 = vstv %s2655_s5  ;;  %v615_v50 = vand.u32 4294901760, %v2429_v53  ;;  %v3728_v48 = vstv %s2718_s16 }
  0x75   : > { %v315_v42 = vsub.f32 %v1781_v59, %v3727_v28  ;;  %v242_v57 = vadd.f32 %v3728_v48, %v240_v25  ;;  %v250_v1 = vmul.f32 %v247_v44, %v247_v44  ;;  %v267_v45 = vmul.f32 %v264_v27, %v264_v27 }
  0x76   : > { %v233_v21 = vmul.f32 %v1781_v59, %v3729_v12  ;;  %v284_v2 = vmul.f32 %v281_v26, %v281_v26  ;;  %v301_v34 = vmul.f32 %v298_v30, %v298_v30  ;;  %v592_v16 = vsub.f32 %v2399_v40, %v591_v54 }
  0x77   : > { %v318_v61 = vmul.f32 %v315_v42, %v315_v42  ;;  %v2952_v3 = vadd.f32 %v244_v43, %v242_v57  ;;  %v2954_v29 = vadd.f32 %v251_v14, %v250_v1  ;;  %v2956_v28 = vadd.f32 %v268_v58, %v267_v45 }
  0x78   : > { %v621_v48 = vand.u32 4294901760, %v2433_v55  ;;  %v2959_v27 = vadd.f32 %v285_v18, %v284_v2  ;;  %v2961_v12 = vadd.f32 %v302_v15, %v301_v34  ;;  %v593_v25 = vand.u32 4294901760, %v592_v16 }
  0x79   : > { %v2963_v59 = vadd.f32 %v319_v17, %v318_v61  ;;  %v253_v43 = vadd.f32 1e-09, %v2954_v29  ;;  %v270_v1 = vadd.f32 1e-09, %v2956_v28  ;;  %v3730_v14 = vstv %s2814_s1  ;;  %s3892_s1 = sld [smem:[#allocation6_spill]] }
  0x7a   : > { %v235_v58 = vadd.f32 %v3730_v14, %v233_v21  ;;  %v3731_v44 = vand.u32 4294901760, %v2397_v39  ;;  %v287_v18 = vadd.f32 1e-09, %v2959_v27  ;;  %v304_v17 = vadd.f32 1e-09, %v2961_v12 }
  0x7b   : > { %v321_v34 = vadd.f32 1e-09, %v2963_v59  ;;  %v2978_v61 = vpack.c.bf16 %v593_v25, %v581_v38  ;;  %2215 = vlog2.f32 %v253_v43  ;;  %v3732_v15 = vand.u32 4294901760, %v2412_v46 }
  0x7c   : > { %v2973_v26 = vpack.c.bf16 %v591_v54, %v3731_v44  ;;  %v2980_v2 = vadd.f32 %v237_v19, %v235_v58  ;;  %v610_v10 = vsub.f32 %v2414_v47, %v609_v23  ;;  %2217 = vlog2.f32 %v270_v1 }
  0x7d   : > { %v598_v16 = vsub.f32 %v2412_v46, %v3732_v15  ;;  %v3733_v31 = vmov %v3732_v15  ;;  %v604_v30 = vsub.f32 %v2427_v52, %v603_v24  ;;  %v616_v42 = vsub.f32 %v2429_v53, %v615_v50 }
  0x7e   : > { %v2988_v54 = vpack.c.bf16 %v609_v23, %v3733_v31  ;;  %2219 = vlog2.f32 %v287_v18  ;;  %v611_v57 = vand.u32 4294901760, %v610_v10  ;;  %v2992_v19 = vpack.c.bf16 %v615_v50, %v603_v24 }
  0x7f   : > { %v599_v38 = vand.u32 4294901760, %v598_v16  ;;  %2221 = vlog2.f32 %v304_v17  ;;  %v605_v45 = vand.u32 4294901760, %v604_v30  ;;  %v617_v21 = vand.u32 4294901760, %v616_v42  ;;  %p151_p1 = scmp.lt.s32.totalorder %s3892_s1, 1 }
  0x80   : > { %v622_v25 = vsub.f32 %v2433_v55, %v621_v48  ;;  %2223 = vlog2.f32 %v321_v34  ;;  %v633_v23 = vand.u32 4294901760, %v2437_v56  ;;  %v627_v1 = vand.u32 4294901760, %v2452_v4 }
  0x81   : > { %v2995_v43 = vpack.c.bf16 %v611_v57, %v599_v38  ;;  %v2999_v14 = vpack.c.bf16 %v617_v21, %v605_v45  ;;  %v639_v44 = vand.u32 4294901760, %v2454_v5  ;;  %v645_v24 = vand.u32 4294901760, %v2456_v6  ;;  %s3916_s1 = smov (!%p151_p1, %s3892_s1), 1 }
  0x82   : > { %v623_v58 = vand.u32 4294901760, %v622_v25  ;;  %v634_v50 = vsub.f32 %v2437_v56, %v633_v23  ;;  %v3004_v18 = vpack.c.bf16 %v633_v23, %v621_v48  ;;  %v628_v17 = vsub.f32 %v2452_v4, %v627_v1 }
  0x83   : > { %v657_v34 = vand.u32 4294901760, %v2469_v11  ;;  %v640_v15 = vsub.f32 %v2454_v5, %v639_v44  ;;  %v3009_v16 = vpack.c.bf16 %v639_v44, %v627_v1  ;;  %v646_v10 = vsub.f32 %v2456_v6, %v645_v24 }
  0x84   : > { %v651_v31 = vand.u32 4294901760, %v2473_v13  ;;  %v635_v30 = vand.u32 4294901760, %v634_v50  ;;  %v629_v42 = vand.u32 4294901760, %v628_v17  ;;  %v663_v25 = vand.u32 4294901760, %v2483_v20 }
  0x85   : > { %v658_v38 = vsub.f32 %v2469_v11, %v657_v34  ;;  %v3014_v57 = vpack.c.bf16 %v657_v34, %v645_v24  ;;  %v641_v48 = vand.u32 4294901760, %v640_v15  ;;  %v647_v45 = vand.u32 4294901760, %v646_v10  ;;  %v2216_v23 = vpop.eup %2215 }
  0x86   : > { %v652_v21 = vsub.f32 %v2473_v13, %v651_v31  ;;  %v3018_v37 = vpack.c.bf16 %v635_v30, %v623_v58  ;;  %v669_v44 = vand.u32 4294901760, %v2485_v22  ;;  %v681_v56 = vand.u32 4294901760, %v2494_v35  ;;  %v2218_v50 = vpop.eup %2217  ;;  %v3805_v13 = vld [vmem:[#allocation53_spill] sm:$0xff] }
  0x87   : > { %v659_v1 = vand.u32 4294901760, %v658_v38  ;;  %v255_v17 = vmul.f32 0.6931472, %v2216_v23  ;;  %v3022_v55 = vpack.c.bf16 %v641_v48, %v629_v42  ;;  %v664_v34 = vsub.f32 %v2483_v20, %v663_v25  ;;  %v3810_v20 = vld [vmem:[#allocation67_spill] sm:$0xff] }
  0x88   : > { %v653_v24 = vand.u32 4294901760, %v652_v21  ;;  %v2220_v15 = vpop.eup %2219  ;;  %v272_v10 = vmul.f32 0.6931472, %v2218_v50  ;;  %v3027_v58 = vpack.c.bf16 %v663_v25, %v651_v31  ;;  %v670_v30 = vsub.f32 %v2485_v22, %v669_v44 }
  0x89   : > { %v3025_v53 = vpack.c.bf16 %v659_v1, %v647_v45  ;;  %v2222_v38 = vpop.eup %2221  ;;  %v256_v23 = vmul.f32 %v255_v17, %v2954_v29  ;;  %v289_v42 = vmul.f32 0.6931472, %v2220_v15  ;;  %v665_v48 = vand.u32 4294901760, %v664_v34 }
  0x8a   : > { %v682_v21 = vsub.f32 %v2494_v35, %v681_v56  ;;  %v2224_v52 = vpop.eup %2223  ;;  %v273_v50 = vmul.f32 %v272_v10, %v2956_v28  ;;  %v306_v45 = vmul.f32 0.6931472, %v2222_v38  ;;  %v671_v31 = vand.u32 4294901760, %v670_v30 }
  0x8b   : > { %v3033_v25 = vpack.c.bf16 %v681_v56, %v669_v44  ;;  %v3734_v1 = vstv %s2669_s23  ;;  %v290_v46 = vmul.f32 %v289_v42, %v2959_v27  ;;  %v323_v29 = vmul.f32 0.6931472, %v2224_v52 }
  0x8c   : > { %v261_v47 = vmul.f32 %v3734_v1, %v256_v23  ;;  %v3735_v17 = vstv %s2774_s10  ;;  %v3736_v15 = vstv %s2686_s20  ;;  %v307_v28 = vmul.f32 %v306_v45, %v2961_v12 }
  0x8d   : > { %v258_v34 = vmul.f32 %v3735_v17, %v256_v23  ;;  %v278_v40 = vmul.f32 %v3736_v15, %v273_v50  ;;  %v3737_v10 = vstv %s2825_s2  ;;  %v3045_v39 = vpack.c.bf16 %v665_v48, %v653_v24  ;;  %s1785_s2 = sshll.u32 %s3916_s1, 4 }
  0x8e   : > { %v275_v38 = vmul.f32 %v3737_v10, %v273_v50  ;;  %v262_v56 = vadd.f32 %v261_v47, %v2952_v3  ;;  %v3738_v44 = vstv %s2704_s22  ;;  %v324_v1 = vmul.f32 %v323_v29, %v2963_v59  ;;  %s159_s21 = scalar_lea.vmem %s3909_s11, %s1785_s2 }
  0x8f   : > { %v295_v30 = vmul.f32 %v3738_v44, %v290_v46  ;;  %v259_v27 = vadd.f32 %v258_v34, %v2980_v2  ;;  %v3739_v52 = vstv %s2753_s30  ;;  %v3740_v23 = vstv %s2827_s9 }
  0x90   : > { %v312_v42 = vmul.f32 %v3739_v52, %v307_v28  ;;  %v292_v17 = vmul.f32 %v3740_v23, %v290_v46  ;;  %v3741_v35 = vstv %s2836_s29  ;;  %v683_v22 = vand.u32 4294901760, %v682_v21 }
  0x91   : > { %v309_v15 = vmul.f32 %v3741_v35, %v307_v28  ;;  %v279_v12 = vadd.f32 %v278_v40, %v262_v56  ;;  %v3742_v45 = vstv %s2766_s0  ;;  %v276_v24 = vadd.f32 %v275_v38, %v259_v27 }
  0x92   : > { %v329_v50 = vmul.f32 %v3742_v45, %v324_v1  ;;  %v3743_v48 = vstv %s2838_s7  ;;  %v3062_v47 = vpack.c.bf16 %v683_v22, %v671_v31  ;;  %v675_v3 = vand.u32 4294901760, %v2496_v36 }
  0x93   : > { %v326_v10 = vmul.f32 %v3743_v48, %v324_v1  ;;  %v687_v59 = vand.u32 4294901760, %v2510_v49  ;;  %v693_v2 = vand.u32 4294901760, %v2514_v51  ;;  %v296_v29 = vadd.f32 %v295_v30, %v279_v12 }
  0x94   : > { %v293_v34 = vadd.f32 %v292_v17, %v276_v24  ;;  %v705_v46 = vand.u32 4294901760, %v2530_v60  ;;  %v699_v35 = vand.u32 4294901760, %v2534_v62  ;;  %v676_v40 = vsub.f32 %v2496_v36, %v675_v3 }
  0x95   : > { %v688_v21 = vsub.f32 %v2510_v49, %v687_v59  ;;  %v3071_v28 = vpack.c.bf16 %v687_v59, %v675_v3  ;;  %v694_v22 = vsub.f32 %v2514_v51, %v693_v2  ;;  %v313_v31 = vadd.f32 %v312_v42, %v296_v29 }
  0x96   : > { %v310_v38 = vadd.f32 %v309_v15, %v293_v34  ;;  %v706_v56 = vsub.f32 %v2530_v60, %v705_v46  ;;  %v3075_v44 = vpack.c.bf16 %v705_v46, %v693_v2  ;;  %v677_v30 = vand.u32 4294901760, %v676_v40 }
  0x97   : > { %v689_v1 = vand.u32 4294901760, %v688_v21  ;;  %v695_v27 = vand.u32 4294901760, %v694_v22  ;;  %v700_v52 = vsub.f32 %v2534_v62, %v699_v35  ;;  %v330_v23 = vadd.f32 %v329_v50, %v313_v31 }
  0x98   : > { %v327_v17 = vadd.f32 %v326_v10, %v310_v38  ;;  %v707_v12 = vand.u32 4294901760, %v706_v56  ;;  %v711_v45 = vand.u32 4294901760, %v2540_v0  ;;  %v717_v42 = vand.u32 4294901760, %v2548_v9 }
  0x99   : > { %v3079_v24 = vpack.c.bf16 %v689_v1, %v677_v30  ;;  %v701_v48 = vand.u32 4294901760, %v700_v52  ;;  %v729_v15 = vand.u32 4294901760, %v2559_v32  ;;  %v3083_v3 = vand.u32 4294901760, %v330_v23 }
  0x9a   : > { %v3085_v59 = vand.u32 4294901760, %v327_v17  ;;  %v3087_v2 = vpack.c.bf16 %v707_v12, %v695_v27  ;;  %v712_v29 = vsub.f32 %v2540_v0, %v711_v45  ;;  %v3090_v50 = vpack.c.bf16 %v711_v45, %v699_v35  ;;  %v3758_v0 = vld [vmem:[#allocation100_spill] sm:$0xff] }
  0x9b   : > { %3744 = vst [vmem:[#allocation101_spill] sm:$0xff] %v3083_v3  ;;  %v718_v10 = vsub.f32 %v2548_v9, %v717_v42  ;;  %v730_v34 = vsub.f32 %v2559_v32, %v729_v15  ;;  %v3094_v46 = vpack.c.bf16 %v729_v15, %v717_v42  ;;  %v3097_v40 = vsub.f32 %v330_v23, %v3083_v3 }
  0x9c   : > { %3745 = vst [vmem:[#allocation102_spill] sm:$0xff] %v3085_v59  ;;  %v3100_v21 = vsub.f32 %v327_v17, %v3085_v59  ;;  %v713_v22 = vand.u32 4294901760, %v712_v29  ;;  %v723_v31 = vand.u32 4294901760, %v2563_v33  ;;  %v735_v35 = vand.u32 4294901760, %v2577_v41 }
  0x9d   : > { %3746 = vst [vmem:[#allocation103_spill] sm:$0xff] %v3097_v40  ;;  %v719_v38 = vand.u32 4294901760, %v718_v10  ;;  %v731_v56 = vand.u32 4294901760, %v730_v34  ;;  %v741_v30 = vand.u32 4294901760, %v2581_v63  ;;  %v532_v1 = vand.u32 4294901760, %v3097_v40  ;;  %v3748_v34 = vld [vmem:[#allocation53_spill] sm:$0xff] }
  0x9e   : > { %3747 = vst [vmem:[#allocation104_spill] sm:$0xff] %v3100_v21  ;;  %v538_v27 = vand.u32 4294901760, %v3100_v21  ;;  %v3107_v52 = vpack.c.bf16 %v713_v22, %v701_v48  ;;  %v724_v23 = vsub.f32 %v2563_v33, %v723_v31  ;;  %v736_v17 = vsub.f32 %v2577_v41, %v735_v35  ;;  %v3749_v33 = vld [vmem:[#allocation54_spill] sm:$0xff] }
  0x9f   : > { %v3110_v12 = vpack.c.bf16 %v731_v56, %v719_v38  ;;  %v3113_v45 = vpack.c.bf16 %v735_v35, %v723_v31  ;;  %v742_v42 = vsub.f32 %v2581_v63, %v741_v30  ;;  %v533_v15 = vsub.f32 %v3097_v40, %v532_v1  ;;  %1274 = vmatprep.mubr.f32.mxu0 %v532_v1  ;;  %v3750_v56 = vld [vmem:[#allocation56_spill] sm:$0xff] }
  0xa0   : > { %v539_v29 = vsub.f32 %v3100_v21, %v538_v27  ;;  %v725_v10 = vand.u32 4294901760, %v724_v23  ;;  %v753_v59 = vand.u32 4294901760, %v3748_v34  ;;  %1278 = vmatmul.mubr.f32.vlgmr.msra.gmra.mrb[0].mxu0 %v538_v27  ;;  %v737_v48 = vand.u32 4294901760, %v736_v17 }
  0xa1   : > { %v743_v22 = vand.u32 4294901760, %v742_v42  ;;  %v747_v38 = vand.u32 4294901760, %v3749_v33  ;;  %v759_v32 = vand.u32 4294901760, %v3750_v56  ;;  %v534_v41 = vand.u32 4294901760, %v533_v15  ;;  %2045 = vmatpush1.bf16.msra.mxu0 %v2888_v8  ;;  %1541 = vmatprep.mubr.f32.mxu0 %v3083_v3  ;;  %v3751_v15 = vld [vmem:[#allocation58_spill] sm:$0xff] }
  0xa2   : > { %v540_v31 = vand.u32 4294901760, %v539_v29  ;;  %v754_v35 = vsub.f32 %v3748_v34, %v753_v59  ;;  %v3123_v40 = vpack.c.bf16 %v753_v59, %v741_v30  ;;  %2047 = vmatprep.subr.bf16.mxu0 %v2896_v7  ;;  %v3127_v1 = vpack.c.bf16 %v737_v48, %v725_v10  ;;  %v3752_v29 = vld [vmem:[#allocation59_spill] sm:$0xff]  ;;  %v3753_v59 = vld [vmem:[#allocation61_spill] sm:$0xff]  ;;  %v3754_v7 = vld [vmem:[#allocation62_spill] sm:$0xff] }
  0xa3   : > { %v748_v27 = vsub.f32 %v3749_v33, %v747_v38  ;;  %v760_v23 = vsub.f32 %v3750_v56, %v759_v32  ;;  %v3131_v17 = vpack.c.bf16 %v759_v32, %v747_v38  ;;  %535 = vmatprep.mubr.f32.mxu1 %v534_v41  ;;  %v765_v8 = vand.u32 4294901760, %v3751_v15  ;;  %v3755_v48 = vld [vmem:[#allocation63_spill] sm:$0xff] }
  0xa4   : > { %v755_v42 = vand.u32 4294901760, %v754_v35  ;;  %v777_v21 = vand.u32 4294901760, %v3752_v29  ;;  %v771_v30 = vand.u32 4294901760, %v3753_v59  ;;  %541 = vmatmul.mubr.f32.vlgmr.msra.gmra.mrb[0].mxu1 %v540_v31  ;;  %v783_v10 = vand.u32 4294901760, %v3754_v7  ;;  %v3756_v33 = vld [vmem:[#allocation99_spill] sm:$0xff]  ;;  %v3757_v35 = vld [vmem:[#allocation65_spill] sm:$0xff] }
  0xa5   : > { %v749_v34 = vand.u32 4294901760, %v748_v27  ;;  %v761_v63 = vand.u32 4294901760, %v760_v23  ;;  %v789_v9 = vand.u32 4294901760, %v3755_v48  ;;  %1853 = vmatpush1.bf16.msra.mxu1 %v3756_v33  ;;  %2049 = vmatpush1.bf16.msra.mxu0 %v2973_v26  ;;  %v766_v41 = vsub.f32 %v3751_v15, %v765_v8  ;;  %v3759_v23 = vld [vmem:[#allocation67_spill] sm:$0xff] }
  0xa6   : > { %v3140_v32 = vpack.c.bf16 %v755_v42, %v743_v22  ;;  %v778_v38 = vsub.f32 %v3752_v29, %v777_v21  ;;  %v801_v56 = vand.u32 4294901760, %v3757_v35  ;;  %1855 = vmatprep.subr.bf16.mxu1 %v3758_v0  ;;  %2051 = vmatprep.subr.bf16.mxu0 %v2988_v54  ;;  %v3149_v27 = vpack.c.bf16 %v777_v21, %v765_v8 }
  0xa7   : > { %v3147_v31 = vpack.c.bf16 %v761_v63, %v749_v34  ;;  %v772_v33 = vsub.f32 %v3753_v59, %v771_v30  ;;  %v795_v26 = vand.u32 4294901760, %v3759_v23  ;;  %v767_v22 = vand.u32 4294901760, %v766_v41  ;;  %932 = vmatprep.mubr.f32.mxu1 %v3083_v3 }
  0xa8   : > { %v779_v42 = vand.u32 4294901760, %v778_v38  ;;  %v784_v15 = vsub.f32 %v3754_v7, %v783_v10  ;;  %v3154_v62 = vpack.c.bf16 %v783_v10, %v771_v30  ;;  %v790_v0 = vsub.f32 %v3755_v48, %v789_v9  ;;  %v3760_v30 = vld [vmem:[#allocation68_spill] sm:$0xff] }
  0xa9   : > { %v773_v29 = vand.u32 4294901760, %v772_v33  ;;  %v802_v63 = vsub.f32 %v3757_v35, %v801_v56  ;;  %v3159_v54 = vpack.c.bf16 %v801_v56, %v789_v9  ;;  %1857 = vmatpush1.bf16.msra.mxu1 %v2978_v61  ;;  %2053 = vmatpush1.bf16.msra.mxu0 %v2992_v19  ;;  %v796_v8 = vsub.f32 %v3759_v23, %v795_v26  ;;  %v3761_v33 = vld [vmem:[#allocation69_spill] sm:$0xff]  ;;  %v3762_v56 = vld [vmem:[#allocation71_spill] sm:$0xff] }
  0xaa   : > { %v3163_v21 = vpack.c.bf16 %v779_v42, %v767_v22  ;;  %v785_v34 = vand.u32 4294901760, %v784_v15  ;;  %v807_v10 = vand.u32 4294901760, %v3760_v30  ;;  %1859 = vmatprep.subr.bf16.mxu1 %v2995_v43  ;;  %2055 = vmatprep.subr.bf16.mxu0 %v3004_v18  ;;  %v791_v41 = vand.u32 4294901760, %v790_v0 }
  0xab   : > { %v803_v38 = vand.u32 4294901760, %v802_v63  ;;  %v813_v9 = vand.u32 4294901760, %v3761_v33  ;;  %v825_v3 = vand.u32 4294901760, %v3762_v56  ;;  %v797_v19 = vand.u32 4294901760, %v796_v8 }
  0xac   : > { %v3171_v61 = vpack.c.bf16 %v785_v34, %v773_v29  ;;  %v808_v22 = vsub.f32 %v3760_v30, %v807_v10  ;;  %v3174_v15 = vpack.c.bf16 %v807_v10, %v795_v26  ;;  %v3767_v29 = vld [vmem:[#allocation72_spill] sm:$0xff]  ;;  %v3768_v34 = vld [vmem:[#allocation74_spill] sm:$0xff] }
  0xad   : > { %v3176_v42 = vpack.c.bf16 %v803_v38, %v791_v41  ;;  %v814_v23 = vsub.f32 %v3761_v33, %v813_v9  ;;  %v826_v43 = vsub.f32 %v3762_v56, %v825_v3  ;;  %v3180_v18 = vpack.c.bf16 %v825_v3, %v813_v9  ;;  %1861 = vmatpush1.bf16.msra.mxu1 %v2999_v14  ;;  %v3770_v38 = vld [vmem:[#allocation77_spill] sm:$0xff]  ;;  %v3771_v9 = vld [vmem:[#allocation79_spill] sm:$0xff] }
  0xae   : > { %3763 = vst [vmem:[#allocation61_spill] sm:$0xff] %v3171_v61  ;;  %3764 = vst [vmem:[#allocation62_spill] sm:$0xff] %v3174_v15  ;;  %2057 = vmatpush1.bf16.msra.mxu0 %v3009_v16  ;;  %v809_v0 = vand.u32 4294901760, %v808_v22  ;;  %v819_v63 = vand.u32 4294901760, %v3767_v29  ;;  %v831_v8 = vand.u32 4294901760, %v3768_v34  ;;  %v3769_v61 = vld [vmem:[#allocation76_spill] sm:$0xff]  ;;  %1863 = vmatprep.subr.bf16.mxu1 %v3018_v37 }
  0xaf   : > { %3765 = vst [vmem:[#allocation63_spill] sm:$0xff] %v3176_v42  ;;  %3766 = vst [vmem:[#allocation99_spill] sm:$0xff] %v3180_v18  ;;  %v837_v26 = vand.u32 4294901760, %v3769_v61  ;;  %2059 = vmatprep.subr.bf16.mxu0 %v3014_v57  ;;  %v815_v10 = vand.u32 4294901760, %v814_v23  ;;  %v827_v41 = vand.u32 4294901760, %v826_v43  ;;  %v849_v3 = vand.u32 4294901760, %v3770_v38 }
  0xb0   : > { %v843_v18 = vand.u32 4294901760, %v3771_v9  ;;  %v3191_v14 = vpack.c.bf16 %v809_v0, %v797_v19  ;;  %v820_v16 = vsub.f32 %v3767_v29, %v819_v63  ;;  %v832_v22 = vsub.f32 %v3768_v34, %v831_v8 }
  0xb1   : > { %v3195_v42 = vpack.c.bf16 %v831_v8, %v819_v63  ;;  %v3197_v15 = vpack.c.bf16 %v827_v41, %v815_v10  ;;  %v838_v37 = vsub.f32 %v3769_v61, %v837_v26  ;;  %v850_v57 = vsub.f32 %v3770_v38, %v849_v3  ;;  %1865 = vmatpush1.bf16.msra.mxu1 %v3022_v55  ;;  %v3777_v10 = vld [vmem:[#allocation82_spill] sm:$0xff] }
  0xb2   : > { %3772 = vst [vmem:[#allocation65_spill] sm:$0xff] %v3191_v14  ;;  %v3201_v23 = vpack.c.bf16 %v849_v3, %v837_v26  ;;  %2061 = vmatpush1.bf16.msra.mxu0 %v3027_v58  ;;  %v821_v19 = vand.u32 4294901760, %v820_v16  ;;  %v833_v43 = vand.u32 4294901760, %v832_v22  ;;  %v844_v0 = vsub.f32 %v3771_v9, %v843_v18  ;;  %v3776_v14 = vld [vmem:[#allocation80_spill] sm:$0xff]  ;;  %1867 = vmatprep.subr.bf16.mxu1 %v3025_v53  ;;  %v3778_v26 = vld [vmem:[#allocation83_spill] sm:$0xff] }
  0xb3   : > { %3773 = vst [vmem:[#allocation100_spill] sm:$0xff] %v3195_v42  ;;  %3774 = vst [vmem:[#allocation68_spill] sm:$0xff] %v3197_v15  ;;  %v855_v34 = vand.u32 4294901760, %v3776_v14  ;;  %2063 = vmatprep.subr.bf16.mxu0 %v3033_v25  ;;  %v839_v63 = vand.u32 4294901760, %v838_v37  ;;  %v851_v8 = vand.u32 4294901760, %v850_v57  ;;  %v861_v41 = vand.u32 4294901760, %v3777_v10 }
  0xb4   : > { %3775 = vst [vmem:[#allocation69_spill] sm:$0xff] %v3201_v23  ;;  %v873_v3 = vand.u32 4294901760, %v3778_v26  ;;  %v3211_v23 = vpack.c.bf16 %v833_v43, %v821_v19  ;;  %v845_v55 = vand.u32 4294901760, %v844_v0  ;;  %v3783_v57 = vld [vmem:[#allocation84_spill] sm:$0xff]  ;;  %v3784_v43 = vld [vmem:[#allocation86_spill] sm:$0xff] }
  0xb5   : > { %v856_v58 = vsub.f32 %v3776_v14, %v855_v34  ;;  %v3214_v16 = vpack.c.bf16 %v855_v34, %v843_v18  ;;  %v3216_v22 = vpack.c.bf16 %v851_v8, %v839_v63  ;;  %v862_v15 = vsub.f32 %v3777_v10, %v861_v41  ;;  %1869 = vmatpush1.bf16.msra.mxu1 %v3045_v39  ;;  %v3786_v8 = vld [vmem:[#allocation89_spill] sm:$0xff] }
  0xb6   : > { %3779 = vst [vmem:[#allocation71_spill] sm:$0xff] %v3211_v23  ;;  %v874_v53 = vsub.f32 %v3778_v26, %v873_v3  ;;  %v3220_v25 = vpack.c.bf16 %v873_v3, %v861_v41  ;;  %2065 = vmatpush1.bf16.msra.mxu0 %v3071_v28  ;;  %v867_v19 = vand.u32 4294901760, %v3783_v57  ;;  %v879_v0 = vand.u32 4294901760, %v3784_v43  ;;  %v3785_v23 = vld [vmem:[#allocation87_spill] sm:$0xff]  ;;  %1871 = vmatprep.subr.bf16.mxu1 %v3062_v47 }
  0xb7   : > { %3780 = vst [vmem:[#allocation72_spill] sm:$0xff] %v3214_v16  ;;  %3781 = vst [vmem:[#allocation76_spill] sm:$0xff] %v3216_v22  ;;  %v857_v37 = vand.u32 4294901760, %v856_v58  ;;  %v885_v18 = vand.u32 4294901760, %v3785_v23  ;;  %2067 = vmatprep.subr.bf16.mxu0 %v3075_v44  ;;  %v863_v34 = vand.u32 4294901760, %v862_v15  ;;  %v897_v41 = vand.u32 4294901760, %v3786_v8 }
  0xb8   : > { %3782 = vst [vmem:[#allocation77_spill] sm:$0xff] %v3220_v25  ;;  %v875_v63 = vand.u32 4294901760, %v874_v53  ;;  %v3787_v3 = vld [vmem:[#allocation91_spill] sm:$0xff]  ;;  %v868_v28 = vsub.f32 %v3783_v57, %v867_v19  ;;  %v880_v58 = vsub.f32 %v3784_v43, %v879_v0  ;;  %v3235_v22 = vpack.c.bf16 %v879_v0, %v867_v19 }
  0xb9   : > { %v891_v25 = vand.u32 4294901760, %v3787_v3  ;;  %v3231_v39 = vpack.c.bf16 %v857_v37, %v845_v55  ;;  %v886_v47 = vsub.f32 %v3785_v23, %v885_v18  ;;  %v898_v44 = vsub.f32 %v3786_v8, %v897_v41  ;;  %1873 = vmatpush1.bf16.msra.mxu1 %v3079_v24  ;;  %v3815_v10 = vld [vmem:[#allocation99_spill] sm:$0xff] }
  0xba   : > { %v3237_v16 = vpack.c.bf16 %v875_v63, %v863_v34  ;;  %v3241_v15 = vpack.c.bf16 %v897_v41, %v885_v18  ;;  %2069 = vmatpush1.bf16.msra.mxu0 %v3090_v50  ;;  %v869_v55 = vand.u32 4294901760, %v868_v28  ;;  %v881_v53 = vand.u32 4294901760, %v880_v58  ;;  %1875 = vmatprep.subr.bf16.mxu1 %v3087_v2  ;;  %v3792_v34 = vld [vmem:[#allocation93_spill] sm:$0xff]  ;;  %v3793_v18 = vld [vmem:[#allocation95_spill] sm:$0xff]  ;;  %v3818_v23 = vld [vmem:[#allocation68_spill] sm:$0xff] }
  0xbb   : > { %3788 = vst [vmem:[#allocation79_spill] sm:$0xff] %v3231_v39  ;;  %v892_v37 = vsub.f32 %v3787_v3, %v891_v25  ;;  %v3791_v39 = vld [vmem:[#allocation92_spill] sm:$0xff]  ;;  %2071 = vmatprep.subr.bf16.mxu0 %v3094_v46  ;;  %v887_v19 = vand.u32 4294901760, %v886_v47  ;;  %v899_v0 = vand.u32 4294901760, %v898_v44  ;;  %v909_v63 = vand.u32 4294901760, %v3792_v34 }
  0xbc   : > { %3789 = vst [vmem:[#allocation80_spill] sm:$0xff] %v3237_v16  ;;  %3790 = vst [vmem:[#allocation83_spill] sm:$0xff] %v3241_v15  ;;  %v903_v42 = vand.u32 4294901760, %v3791_v39  ;;  %v921_v41 = vand.u32 4294901760, %v3793_v18  ;;  %v3251_v15 = vpack.c.bf16 %v881_v53, %v869_v55  ;;  %v3794_v44 = vld [vmem:[#allocation96_spill] sm:$0xff]  ;;  %v3795_v53 = vld [vmem:[#allocation98_spill] sm:$0xff] }
  0xbd   : > { %v893_v24 = vand.u32 4294901760, %v892_v37  ;;  %v3256_v58 = vpack.c.bf16 %v899_v0, %v887_v19  ;;  %v910_v16 = vsub.f32 %v3792_v34, %v909_v63  ;;  %1877 = vmatpush1.bf16.msra.mxu1 %v3107_v52  ;;  %v915_v55 = vand.u32 4294901760, %v3794_v44 }
  0xbe   : > { %v904_v50 = vsub.f32 %v3791_v39, %v903_v42  ;;  %v3254_v28 = vpack.c.bf16 %v903_v42, %v891_v25  ;;  %v922_v2 = vsub.f32 %v3793_v18, %v921_v41  ;;  %v3260_v46 = vpack.c.bf16 %v921_v41, %v909_v63  ;;  %2073 = vmatpush1.bf16.msra.mxu0 %v3113_v45  ;;  %v3821_v34 = vld [vmem:[#allocation72_spill] sm:$0xff] }
  0xbf   : > { %v927_v37 = vand.u32 4294901760, %v3795_v53  ;;  %1879 = vmatprep.subr.bf16.mxu1 %v3110_v12  ;;  %2075 = vmatprep.subr.bf16.mxu0 %v3123_v40  ;;  %v911_v42 = vand.u32 4294901760, %v910_v16  ;;  %v916_v0 = vsub.f32 %v3794_v44, %v915_v55  ;;  %v3803_v40 = vld [vmem:[#allocation50_spill] sm:$0xff]  ;;  %v3804_v16 = vld [vmem:[#allocation52_spill] sm:$0xff]  ;;  %v3820_v12 = vld [vmem:[#allocation71_spill] sm:$0xff] }
  0xc0   : > { %v905_v47 = vand.u32 4294901760, %v904_v50  ;;  %v923_v25 = vand.u32 4294901760, %v922_v2  ;;  %v3797_v2 = vld [vmem:[#allocation38_spill] sm:$0xff]  ;;  %v3822_v51 = vld [vmem:[#allocation76_spill] sm:$0xff] }
  0xc1   : > { %v928_v63 = vsub.f32 %v3795_v53, %v927_v37  ;;  %v2104_v41 = vpack.c.bf16 %v927_v37, %v915_v55  ;;  %1881 = vmatpush1.bf16.msra.mxu1 %v3127_v1  ;;  %v917_v45 = vand.u32 4294901760, %v916_v0  ;;  %v3798_v37 = vld [vmem:[#allocation43_spill] sm:$0xff]  ;;  %v3806_v1 = vld [vmem:[#allocation54_spill] sm:$0xff]  ;;  %v3812_v0 = vld [vmem:[#allocation61_spill] sm:$0xff] }
  0xc2   : > { %v1908_v19 = vpack.c.bf16 %v905_v47, %v893_v24  ;;  %v1910_v52 = vpack.c.bf16 %v923_v25, %v911_v42  ;;  %2077 = vmatpush1.bf16.msra.mxu0 %v3131_v17  ;;  %1883 = vmatprep.subr.bf16.mxu1 %v3140_v32  ;;  %v3796_v24 = vld [vmem:[#allocation36_spill] sm:$0xff]  ;;  %v3801_v25 = vld [vmem:[#allocation47_spill] sm:$0xff]  ;;  %v3808_v55 = vld [vmem:[#allocation58_spill] sm:$0xff] }
  0xc3   : > { %v929_v50 = vand.u32 4294901760, %v928_v63  ;;  %2079 = vmatprep.subr.bf16.mxu0 %v3149_v27  ;;  %v3799_v32 = vld [vmem:[#allocation44_spill] sm:$0xff]  ;;  %v3800_v27 = vld [vmem:[#allocation45_spill] sm:$0xff]  ;;  %v3809_v17 = vld [vmem:[#allocation59_spill] sm:$0xff] }
  0xc4   : > { %v3802_v63 = vld [vmem:[#allocation49_spill] sm:$0xff]  ;;  %v3813_v42 = vld [vmem:[#allocation62_spill] sm:$0xff] }
  0xc5   : > { %v1912_v47 = vpack.c.bf16 %v929_v50, %v917_v45  ;;  %v3807_v45 = vld [vmem:[#allocation56_spill] sm:$0xff]  ;;  %1885 = vmatpush1.bf16.msra.mxu1 %v3147_v31  ;;  %v3819_v31 = vld [vmem:[#allocation69_spill] sm:$0xff] }
  0xc6   : > { %2081 = vmatpush1.bf16.msra.mxu0 %v3154_v62  ;;  %1887 = vmatprep.subr.bf16.mxu1 %v3163_v21  ;;  %v3811_v62 = vld [vmem:[#allocation74_spill] sm:$0xff]  ;;  %v3814_v21 = vld [vmem:[#allocation63_spill] sm:$0xff]  ;;  %v3817_v50 = vld [vmem:[#allocation100_spill] sm:$0xff] }
  0xc7   : > { %2083 = vmatprep.subr.bf16.mxu0 %v3159_v54  ;;  %v3816_v54 = vld [vmem:[#allocation65_spill] sm:$0xff] }
  0xc9   : > { %1889 = vmatpush1.bf16.msra.mxu1 %v3812_v0  ;;  %v3823_v0 = vld [vmem:[#allocation77_spill] sm:$0xff] }
  0xca   : > { %2085 = vmatpush1.bf16.msra.mxu0 %v3813_v42  ;;  %1891 = vmatprep.subr.bf16.mxu1 %v3814_v21  ;;  %v3824_v42 = vld [vmem:[#allocation79_spill] sm:$0xff] }
  0xcb   : > { %2087 = vmatprep.subr.bf16.mxu0 %v3815_v10  ;;  %v3825_v10 = vld [vmem:[#allocation80_spill] sm:$0xff]  ;;  %v3826_v21 = vld [vmem:[#allocation83_spill] sm:$0xff] }
  0xcd   : > { %1893 = vmatpush1.bf16.msra.mxu1 %v3816_v54  ;;  %v3833_v54 = vld [vmem:[#allocation14_spill] sm:$0xff] }
  0xce   : > { %2089 = vmatpush1.bf16.msra.mxu0 %v3817_v50  ;;  %1895 = vmatprep.subr.bf16.mxu1 %v3818_v23  ;;  %v3828_v23 = vld [vmem:[#allocation12_spill] sm:$0xff]  ;;  %v3831_v50 = vld [vmem:[#allocation13_spill] sm:$0xff] }
  0xcf   : > { %2091 = vmatprep.subr.bf16.mxu0 %v3819_v31  ;;  %v3832_v31 = vld [vmem:[#allocation15_spill] sm:$0xff] }
  0xd1   : > { %1897 = vmatpush1.bf16.msra.mxu1 %v3820_v12  ;;  %v3829_v12 = vld [vmem:[#allocation10_spill] sm:$0xff] }
  0xd2   : > { %2093 = vmatpush1.bf16.msra.mxu0 %v3821_v34  ;;  %1899 = vmatprep.subr.bf16.mxu1 %v3822_v51  ;;  %v3827_v51 = vld [vmem:[#allocation11_spill] sm:$0xff] }
  0xd3   : > { %2095 = vmatprep.subr.bf16.mxu0 %v3823_v0  ;;  %v1914_v34 = vpack.c.bf16 %v3828_v23, %v3827_v51  ;;  %v3839_v0 = vld [vmem:[#allocation21_spill] sm:$0xff]  ;;  %v3843_v23 = vld [vmem:[#allocation22_spill] sm:$0xff] }
  0xd5   : > { %1901 = vmatpush1.bf16.msra.mxu1 %v3824_v42 }
  0xd6   : > { %2097 = vmatpush1.bf16.msra.mxu0 %v3235_v22  ;;  %1903 = vmatprep.subr.bf16.mxu1 %v3825_v10  ;;  %v3830_v22 = vld [vmem:[#allocation102_spill] sm:$0xff]  ;;  %v3841_v10 = vld [vmem:[#allocation23_spill] sm:$0xff] }
  0xd7   : > { %2099 = vmatprep.subr.bf16.mxu0 %v3826_v21  ;;  %v3842_v21 = vld [vmem:[#allocation24_spill] sm:$0xff] }
  0xd8   : > { %v1922_v51 = vpack.c.bf16 %v3842_v21, %v3841_v10  ;;  %v3857_v10 = vld [vmem:[#allocation35_spill] sm:$0xff]  ;;  %v3858_v21 = vld [vmem:[#allocation34_spill] sm:$0xff] }
  0xd9   : > { %1905 = vmatpush1.bf16.msra.mxu1 %v3251_v15  ;;  %v1916_v15 = vpack.c.bf16 %v3832_v31, %v3831_v50  ;;  %v3846_v50 = vld [vmem:[#allocation27_spill] sm:$0xff] }
  0xda   : > { %2101 = vmatpush1.bf16.msra.mxu0 %v3254_v28  ;;  %1907 = vmatprep.subr.bf16.mxu1 %v3256_v58  ;;  %v3834_v28 = vld [vmem:[#allocation17_spill] sm:$0xff]  ;;  %v3835_v58 = vld [vmem:[#allocation18_spill] sm:$0xff] }
  0xdb   : > { %2103 = vmatprep.subr.bf16.mxu0 %v3260_v46  ;;  %v1918_v46 = vpack.c.bf16 %v3835_v58, %v3834_v28  ;;  %v3849_v28 = vld [vmem:[#allocation30_spill] sm:$0xff] }
  0xdd   : > { %1909 = vmatpush1.bf16.msra.mxu1 %v1908_v19  ;;  %v3836_v19 = vld [vmem:[#allocation16_spill] sm:$0xff] }
  0xde   : > { %2105 = vmatpush1.bf16.msra.mxu0 %v2104_v41  ;;  %1911 = vmatprep.subr.bf16.mxu1 %v1910_v52  ;;  %v3837_v41 = vld [vmem:[#allocation101_spill] sm:$0xff]  ;;  %v3838_v52 = vld [vmem:[#allocation20_spill] sm:$0xff] }
  0xdf   : > { %2107 = vmatprep.subr.bf16.mxu0 %v3829_v12  ;;  %v1920_v42 = vpack.c.bf16 %v3839_v0, %v3838_v52  ;;  %v3845_v12 = vld [vmem:[#allocation26_spill] sm:$0xff]  ;;  %v3853_v52 = vpack.c.bf16 %v2454_v5, %v2452_v4  ;;  %v3854_v0 = vld [vmem:[#allocation33_spill] sm:$0xff]  ;;  %v3862_v4 = vld [vmem:[#allocation40_spill] sm:$0xff]  ;;  %v3863_v5 = vpack.c.bf16 %v2510_v49, %v2496_v36  ;;  %v3872_v49 = vpack.c.bf16 %v3803_v40, %v3802_v63 }
  0xe0   : > { %v1924_v31 = vpack.c.bf16 %v3846_v50, %v3845_v12  ;;  %v3867_v50 = vld [vmem:[#allocation46_spill] sm:$0xff]  ;;  %v3871_v36 = vld [vmem:[#allocation51_spill] sm:$0xff]  ;;  %v3879_v40 = vld [vmem:[#allocation64_spill] sm:$0xff]  ;;  %v3880_v63 = vpack.c.bf16 %v3754_v7, %v3753_v59  ;;  %v3888_v7 = vpack.c.bf16 %v3811_v62, %v3767_v29 }
  0xe1   : > { %1543 = vmatmul.mubr.f32.vlgmr.msra.gmra.mrb[0].mxu0 %v3830_v22  ;;  %1913 = vmatpush1.bf16.msra.mxu1 %v1912_v47  ;;  %v3840_v47 = vld [vmem:[#allocation19_spill] sm:$0xff]  ;;  %v3897_v62 = vld [vmem:[#allocation88_spill] sm:$0xff] }
  0xe2   : > { %2109 = vmatpush1.bf16.msra.mxu0 %v3833_v54  ;;  %1915 = vmatprep.subr.bf16.mxu1 %v1914_v34  ;;  %v3844_v34 = vld [vmem:[#allocation103_spill] sm:$0xff]  ;;  %v3847_v54 = vld [vmem:[#allocation25_spill] sm:$0xff] }
  0xe3   : > { %2111 = vmatprep.subr.bf16.mxu0 %v3836_v19  ;;  %1678 = vmatprep.mubr.f32.mxu0 %v3837_v41  ;;  %v3850_v19 = vld [vmem:[#allocation28_spill] sm:$0xff]  ;;  %v3887_v59 = vld [vmem:[#allocation75_spill] sm:$0xff] }
  0xe4   : > { %934 = vmatmul.mubr.f32.vlgmr.msra.gmra.mrb[0].mxu1 %v3830_v22  ;;  %v3852_v41 = vld [vmem:[#allocation32_spill] sm:$0xff] }
  0xe5   : > { %1917 = vmatpush1.bf16.msra.mxu1 %v1916_v15  ;;  %1134 = vmatprep.mubr.f32.mxu1 %v3844_v34  ;;  %v3848_v15 = vld [vmem:[#allocation29_spill] sm:$0xff]  ;;  %v3861_v34 = vpack.c.bf16 %v3797_v2, %v3796_v24  ;;  %v3869_v24 = vld [vmem:[#allocation48_spill] sm:$0xff]  ;;  %v3870_v2 = vpack.c.bf16 %v3801_v25, %v3800_v27  ;;  %v3878_v25 = vpack.c.bf16 %v3809_v17, %v3808_v55 }
  0xe6   : > { %2113 = vmatpush1.bf16.msra.mxu0 %v3840_v47  ;;  %1919 = vmatprep.subr.bf16.mxu1 %v1918_v46  ;;  %v1926_v58 = vpack.c.bf16 %v3849_v28, %v3848_v15  ;;  %v3851_v46 = vld [vmem:[#allocation31_spill] sm:$0xff]  ;;  %v3856_v47 = vld [vmem:[#allocation37_spill] sm:$0xff]  ;;  %v3877_v27 = vld [vmem:[#allocation60_spill] sm:$0xff]  ;;  %v3886_v55 = vpack.c.bf16 %v3762_v56, %v3761_v33 }
  0xe7   : > { %2115 = vmatprep.subr.bf16.mxu0 %v3843_v23  ;;  %v3860_v23 = vld [vmem:[#allocation39_spill] sm:$0xff]  ;;  %v3885_v17 = vld [vmem:[#allocation73_spill] sm:$0xff]  ;;  %v3895_v56 = vld [vmem:[#allocation82_spill] sm:$0xff] }
  0xe8   : > { %v3894_v33 = vld [vmem:[#allocation85_spill] sm:$0xff]  ;;  %v3896_v29 = vpack.c.bf16 %v3778_v26, %v3895_v56  ;;  %v3900_v15 = vld [vmem:[#allocation87_spill] sm:$0xff] }
  0xe9   : > { %1921 = vmatpush1.bf16.msra.mxu1 %v1920_v42  ;;  %v3855_v42 = vpack.c.bf16 %v2469_v11, %v2456_v6  ;;  %v3864_v6 = vld [vmem:[#allocation42_spill] sm:$0xff]  ;;  %v3865_v11 = vld [vmem:[#allocation41_spill] sm:$0xff]  ;;  %v3901_v28 = vpack.c.bf16 %v3786_v8, %v3900_v15 }
  0xea   : > { %2117 = vmatpush1.bf16.msra.mxu0 %v3847_v54  ;;  %1923 = vmatprep.subr.bf16.mxu1 %v1922_v51  ;;  %v3859_v51 = vpack.c.bf16 %v3857_v10, %v3858_v21  ;;  %v3866_v12 = vpack.c.bf16 %v2530_v60, %v3865_v11  ;;  %v3873_v60 = vld [vmem:[#allocation55_spill] sm:$0xff]  ;;  %v3874_v54 = vpack.c.bf16 %v3805_v13, %v3804_v16  ;;  %v3881_v13 = vld [vmem:[#allocation66_spill] sm:$0xff]  ;;  %v3904_v26 = vld [vmem:[#allocation97_spill] sm:$0xff] }
  0xeb   : > { %2119 = vmatprep.subr.bf16.mxu0 %v3850_v19  ;;  %v3882_v16 = vpack.c.bf16 %v3757_v35, %v3755_v48  ;;  %v3889_v48 = vld [vmem:[#allocation78_spill] sm:$0xff]  ;;  %v3890_v35 = vpack.c.bf16 %v3770_v38, %v3769_v61  ;;  %v3898_v61 = vpack.c.bf16 %v3784_v43, %v3783_v57  ;;  %v3907_v57 = vpack.c.bf16 %v3795_v53, %v3794_v44  ;;  %v3908_v43 = vld [vmem:[#allocation104_spill] sm:$0xff] }
  0xec   : > { %v3899_v38 = vld [vmem:[#allocation90_spill] sm:$0xff] }
  0xed   : > { %1925 = vmatpush1.bf16.msra.mxu1 %v1924_v31  ;;  %v3868_v31 = vpack.c.bf16 %v3799_v32, %v3798_v37  ;;  %v3875_v37 = vld [vmem:[#allocation57_spill] sm:$0xff]  ;;  %v3876_v32 = vpack.c.bf16 %v3807_v45, %v3806_v1  ;;  %v3883_v1 = vld [vmem:[#allocation70_spill] sm:$0xff]  ;;  %v3884_v45 = vpack.c.bf16 %v3760_v30, %v3810_v20  ;;  %v3893_v30 = vpack.c.bf16 %v3776_v14, %v3771_v9 }
  0xee   : > { %2121 = vmatpush1.bf16.msra.mxu0 %v3851_v46  ;;  %1927 = vmatprep.subr.bf16.mxu1 %v1926_v58  ;;  %v3891_v20 = vld [vmem:[#allocation81_spill] sm:$0xff]  ;;  %v3902_v9 = vld [vmem:[#allocation94_spill] sm:$0xff]  ;;  %v3903_v14 = vpack.c.bf16 %v3791_v39, %v3787_v3 }
  0xef   : > { %2123 = vmatprep.subr.bf16.mxu0 %v3852_v41  ;;  %v3905_v58 = vld [vmem:[#allocation93_spill] sm:$0xff] }
  0xf0   : > { %v3906_v19 = vpack.c.bf16 %v3793_v18, %v3905_v58 }
  0xf1   : > { %1929 = vmatpush1.bf16.msra.mxu1 %v3853_v52 }
  0xf2   : > { %2125 = vmatpush1.bf16.msra.mxu0 %v3854_v0  ;;  %1931 = vmatprep.subr.bf16.mxu1 %v3855_v42 }
  0xf3   : > { %2127 = vmatprep.subr.bf16.mxu0 %v3856_v47 }
  0xf5   : > { %1933 = vmatpush1.bf16.msra.mxu1 %v3859_v51 }
  0xf6   : > { %2129 = vmatpush1.bf16.msra.mxu0 %v3860_v23  ;;  %1935 = vmatprep.subr.bf16.mxu1 %v3861_v34 }
  0xf7   : > { %2131 = vmatprep.subr.bf16.mxu0 %v3862_v4 }
  0xf9   : > { %1937 = vmatpush1.bf16.msra.mxu1 %v3863_v5 }
  0xfa   : > { %2133 = vmatpush1.bf16.msra.mxu0 %v3864_v6  ;;  %1939 = vmatprep.subr.bf16.mxu1 %v3866_v12 }
  0xfb   : > { %2135 = vmatprep.subr.bf16.mxu0 %v3867_v50 }
  0xfd   : > { %1941 = vmatpush1.bf16.msra.mxu1 %v3868_v31 }
  0xfe   : > { %2137 = vmatpush1.bf16.msra.mxu0 %v3869_v24  ;;  %1943 = vmatprep.subr.bf16.mxu1 %v3870_v2 }
  0xff   : > { %2139 = vmatprep.subr.bf16.mxu0 %v3871_v36 }
 0x101   : > { %1945 = vmatpush1.bf16.msra.mxu1 %v3872_v49 }
 0x102   : > { %2141 = vmatpush1.bf16.msra.mxu0 %v3873_v60  ;;  %1947 = vmatprep.subr.bf16.mxu1 %v3874_v54 }
 0x103   : > { %2143 = vmatprep.subr.bf16.mxu0 %v3875_v37 }
 0x105   : > { %1949 = vmatpush1.bf16.msra.mxu1 %v3876_v32 }
 0x106   : > { %2145 = vmatpush1.bf16.msra.mxu0 %v3877_v27  ;;  %1951 = vmatprep.subr.bf16.mxu1 %v3878_v25 }
 0x107   : > { %2147 = vmatprep.subr.bf16.mxu0 %v3879_v40 }
 0x109   : > { %1953 = vmatpush1.bf16.msra.mxu1 %v3880_v63 }
 0x10a   : > { %2149 = vmatpush1.bf16.msra.mxu0 %v3881_v13  ;;  %1955 = vmatprep.subr.bf16.mxu1 %v3882_v16 }
 0x10b   : > { %2151 = vmatprep.subr.bf16.mxu0 %v3883_v1 }
 0x10d   : > { %1957 = vmatpush1.bf16.msra.mxu1 %v3884_v45 }
 0x10e   : > { %2153 = vmatpush1.bf16.msra.mxu0 %v3885_v17  ;;  %1959 = vmatprep.subr.bf16.mxu1 %v3886_v55 }
 0x10f   : > { %2155 = vmatprep.subr.bf16.mxu0 %v3887_v59 }
 0x111   : > { %1961 = vmatpush1.bf16.msra.mxu1 %v3888_v7 }
 0x112   : > { %2157 = vmatpush1.bf16.msra.mxu0 %v3889_v48  ;;  %1963 = vmatprep.subr.bf16.mxu1 %v3890_v35 }
 0x113   : > { %2159 = vmatprep.subr.bf16.mxu0 %v3891_v20 }
 0x115   : > { %1965 = vmatpush1.bf16.msra.mxu1 %v3893_v30 }
 0x116   : > { %2161 = vmatpush1.bf16.msra.mxu0 %v3894_v33  ;;  %1967 = vmatprep.subr.bf16.mxu1 %v3896_v29 }
 0x117   : > { %2163 = vmatprep.subr.bf16.mxu0 %v3897_v62 }
 0x119   : > { %1969 = vmatpush1.bf16.msra.mxu1 %v3898_v61 }
 0x11a   : > { %2165 = vmatpush1.bf16.msra.mxu0 %v3899_v38  ;;  %1971 = vmatprep.subr.bf16.mxu1 %v3901_v28 }
 0x11b   : > { %2167 = vmatprep.subr.bf16.mxu0 %v3902_v9 }
 0x11d   : > { %1973 = vmatpush1.bf16.msra.mxu1 %v3903_v14 }
 0x11e   : > { %2169 = vmatpush1.bf16.msra.mxu0 %v3904_v26  ;;  %1975 = vmatprep.subr.bf16.mxu1 %v3906_v19 }
 0x121   : > { %1680 = vmatmul.mubr.f32.vlgmr.msra.gmra.mrb[0].mxu0 %v3830_v22  ;;  %1977 = vmatpush1.bf16.msra.mxu1 %v3907_v57 }
 0x124   : > { %1137 = vmatmul.mubr.f32.vlgmr.msra.gmra.mrb[0].mxu1 %v3908_v43 }
 0x1f4   : > { %v1681_v8 = vpop.f32.mrb[0].mxu0 }
 0x1f5   : > { %v1683_v3 = vpop.f32.mrb[1].mxu0 }
 0x1f7   : > { %v1138_v39 = vpop.f32.mrb[0].mxu1 }
 0x1f8   : > { %v2170_v18 = vadd.f32 %v1681_v8, %v1138_v39  ;;  %v1140_v46 = vpop.f32.mrb[1].mxu1 }
 0x1f9   : > { %v2171_v41 = vadd.f32 %v1683_v3, %v1140_v46 }
 0x1fa   : > { %1686 = vst [vmem:[%s159_s21] sm:$0xff] %v2170_v18 }
 0x1fb   : > { %1687 = vst [vmem:[%s159_s21 + $0x8] sm:$0xff] %v2171_v41 }
 0x1fc PF: > { %s3910_s26 = sld [smem:[#allocation8_spill]]  ;;  %s3911_s9 = sld [smem:[#allocation7_spill]] }
 0x1fd   : > { %s3912_s10 = sld [smem:[#allocation9_spill]] }
 0x202   : > { %s13_s11 = sadd.s32 1, %s3910_s26  }
 0x203   : > { %p10_p2 = scmp.ge.s32.totalorder %s13_s11, 4  }
 0x205   :  { %12 = sbr.rel (!%p10_p2) target bundleno = 6 (0x6), region = 61 }
 0x20c   :  { %1717 = vsyncpa [#allocation4], 1 }
 0x20d   :  { %1719 = vsyncpa [#allocation4 + $0x1], 1 }

</bundles_post_ra>
